<compile_context>
chip_gen: v5e
topology: v5e:2x2
jax: 0.10.0
libtpu: 0.0.40
codegen_flags: <defaults>
</compile_context>

<pallas_src>
import math
import functools

import jax
import jax.numpy as jnp
from jax import lax
from jax.experimental import pallas as pl
from jax.experimental.pallas import tpu as pltpu

# ----- small config (consistent with LLaMAConfig) -----
DIM = 32
N_LAYERS = 2
N_HEADS = 4
HEAD_DIM = DIM // N_HEADS
VOCAB = 256
MULTIPLE_OF = 256
MLP_HIDDEN = MULTIPLE_OF * ((int(2 * (4 * DIM) / 3) + MULTIPLE_OF - 1) // MULTIPLE_OF)  # 256
EPS = 1e-6
MAX_POS = 2048
PAD_ID = 0
NEG_INF = -65504.0  # torch.finfo(float16).min


def _rmsnorm(x, w, eps):
    var = jnp.mean(x * x, axis=-1, keepdims=True)
    return x * lax.rsqrt(var + eps) * w.reshape(1, -1)


# --------------------------------------------------------------------------
# Fused kernel: one grid step = one batch chunk of BB sequences.
# All linear layers run at M = BB*S rows; attention scores/softmax are head-batched
# per sequence.  All weights are VMEM-resident for the whole call.
# --------------------------------------------------------------------------
def fused_forward_kernel(hid_ref, cos_ref, sin_ref,
                         ln1_ref, wqkv_ref, wo_ref, ln2_ref, wgu_ref, wd_ref,
                         fln_ref, wh_ref, out_ref,
                         *, n_layers, n_heads, head_dim, dim, mlp_hidden, eps):
    BB, S, _ = hid_ref.shape
    M = BB * S
    bf16 = jnp.bfloat16

    x = hid_ref[...].reshape(M, dim)                                   # residual stream, f32
    # replicate cos/sin across heads once (hoisted; wrapper passes them untiled [BB,S,Hd])
    cos_t = jnp.tile(cos_ref[...].reshape(M, head_dim), (1, n_heads))  # [M, D]
    sin_t = jnp.tile(sin_ref[...].reshape(M, head_dim), (1, n_heads))  # [M, D]

    # causal additive mask generated in-kernel (no HBM stream); broadcast over heads
    rows = lax.broadcasted_iota(jnp.int32, (S, S), 0)
    cols = lax.broadcasted_iota(jnp.int32, (S, S), 1)
    mask_add = jnp.where(cols <= rows, 0.0, NEG_INF).astype(jnp.float32)

    def heads_leading(t):  # [S, H*Hd] -> [H, S, Hd] via static lane slices (no transpose op)
        return jnp.stack([t[:, h * head_dim:(h + 1) * head_dim] for h in range(n_heads)],
                         axis=0)

    for l in range(n_layers):            # static unrolled; weights indexed with static l
        # ---- attention ----
        xn = _rmsnorm(x, ln1_ref[l], eps).astype(bf16)                 # input_layernorm
        # fused [D, 5D] weight = [Wq | Wq@P | Wk/sqrt(hd) | (Wk/sqrt(hd))@P | Wv]
        qkv = jnp.dot(xn, wqkv_ref[l], preferred_element_type=jnp.float32)   # [M, 5D]
        # RoPE: rotate_half folded into the weight columns -> pure VPU fmas here
        q = qkv[:, 0 * dim:1 * dim] * cos_t + qkv[:, 1 * dim:2 * dim] * sin_t
        k = qkv[:, 2 * dim:3 * dim] * cos_t + qkv[:, 3 * dim:4 * dim] * sin_t
        v = qkv[:, 4 * dim:5 * dim]

        outs = []
        for b in range(BB):              # static unrolled over the chunk's batch elements
            sl = slice(b * S, (b + 1) * S)
            q3 = heads_leading(q[sl]).astype(bf16)                     # [H, S, Hd]
            k3 = heads_leading(k[sl]).astype(bf16)
            v3 = heads_leading(v[sl]).astype(bf16)
            s = jnp.einsum('hqd,hkd->hqk', q3, k3,
                           preferred_element_type=jnp.float32)         # [H, S, S]
            s = s + mask_add[None, :, :]
            s = s - jnp.max(s, axis=-1, keepdims=True)
            p = jnp.exp(s)
            p = p * pl.reciprocal(jnp.sum(p, axis=-1, keepdims=True), approx=True)
            o3 = jnp.einsum('hqk,hkd->hqd', p.astype(bf16), v3,
                            preferred_element_type=jnp.float32)        # [H, S, Hd]
            outs.append(jnp.concatenate([o3[h] for h in range(n_heads)], axis=-1))  # [S, D]
        o2 = outs[0] if BB == 1 else jnp.concatenate(outs, axis=0)     # [M, D]

        attn_out = jnp.dot(o2.astype(bf16), wo_ref[l],
                           preferred_element_type=jnp.float32)         # single O-projection
        h1 = x + attn_out

        # ---- SwiGLU MLP ----
        hn = _rmsnorm(h1, ln2_ref[l], eps).astype(bf16)                # post_attention_layernorm
        gu = jnp.dot(hn, wgu_ref[l], preferred_element_type=jnp.float32)   # [M, 2H]
        g = gu[:, :mlp_hidden]
        u = gu[:, mlp_hidden:]
        act = (g * jax.nn.sigmoid(g) * u).astype(bf16)                 # silu(gate) * up
        x = h1 + jnp.dot(act, wd_ref[l], preferred_element_type=jnp.float32)

    # ---- final RMSNorm + lm_head (lane-dense [M, VOCAB] output) ----
    xn = _rmsnorm(x, fln_ref[...], eps).astype(bf16)
    logits = jnp.dot(xn, wh_ref[...], preferred_element_type=jnp.float32)
    out_ref[...] = logits.reshape(BB, S, out_ref.shape[-1])


def llama_forward_pallas(params, input_ids, batch_chunks=None):
    B, S = input_ids.shape
    if batch_chunks is None:
        # 2 chunks feed both v7x TensorCores; on single-TC v5e/v6e pass batch_chunks=1 to
        # fold the whole batch into M for every matmul.
        batch_chunks = 2 if (B % 2 == 0 and B >= 2) else 1
    assert B % batch_chunks == 0
    BB = B // batch_chunks

    rope_ids = create_rope_embed_ids(input_ids)                  # [B, S]
    cos = jnp.take(params["cos_cache"], rope_ids, axis=0)        # [B, S, Hd]  (untiled)
    sin = jnp.take(params["sin_cache"], rope_ids, axis=0)
    hidden = jnp.take(params["embed"], input_ids, axis=0)        # [B, S, D]

    L = N_LAYERS
    kern = functools.partial(fused_forward_kernel,
                             n_layers=N_LAYERS, n_heads=N_HEADS, head_dim=HEAD_DIM,
                             dim=DIM, mlp_hidden=MLP_HIDDEN, eps=EPS)

    def full(*shape):                   # grid-invariant (weight) blocks
        nz = len(shape)
        return pl.BlockSpec(shape, lambda i, _nz=nz: (0,) * _nz)

    return pl.pallas_call(
        kern,
        out_shape=jax.ShapeDtypeStruct((B, S, VOCAB), jnp.float32),
        grid=(batch_chunks,),
        in_specs=[
            pl.BlockSpec((BB, S, DIM), lambda i: (i, 0, 0)),      # hidden
            pl.BlockSpec((BB, S, HEAD_DIM), lambda i: (i, 0, 0)), # cos (untiled)
            pl.BlockSpec((BB, S, HEAD_DIM), lambda i: (i, 0, 0)), # sin (untiled)
            full(L, DIM),                                         # input_layernorm weights
            full(L, DIM, 5 * DIM),                                # Wq|Wq@P|Wk'|Wk'@P|Wv (bf16)
            full(L, DIM, DIM),                                    # Wo (bf16)
            full(L, DIM),                                         # post_attention_layernorm
            full(L, DIM, 2 * MLP_HIDDEN),                         # Wgate|Wup (bf16)
            full(L, MLP_HIDDEN, DIM),                             # Wdown (bf16)
            full(1, DIM),                                         # final norm weight
            full(DIM, VOCAB),                                     # lm_head (bf16)
        ],
        out_specs=pl.BlockSpec((BB, S, VOCAB), lambda i: (i, 0, 0)),
        compiler_params=pltpu.CompilerParams(dimension_semantics=("parallel",)),
    )(hidden, cos, sin,
      params["ln1"], params["wqkv"], params["wo"],
      params["ln2"], params["wgu"], params["wd"],
      params["final_ln"], params["lm_head"])


# --------------------------------------------------------------------------
# Plain-JAX glue (rope ids / rope cache / embedding gather / param init)
# --------------------------------------------------------------------------
def create_rope_embed_ids(input_ids):
    x = jnp.cumsum((input_ids != PAD_ID).astype(jnp.int32), axis=-1) - 1
    return jnp.where(input_ids == PAD_ID, MAX_POS - 1, x)


def build_rope_cache(head_dim, max_pos=MAX_POS, base=10000.0):
    inv_freq = 1.0 / (base ** (jnp.arange(0, head_dim, 2, dtype=jnp.float32) / head_dim))
    t = jnp.arange(max_pos, dtype=jnp.float32)
    freqs = jnp.einsum("i,j->ij", t, inv_freq)
    emb = jnp.concatenate([freqs, freqs], axis=-1)
    return jnp.cos(emb), jnp.sin(emb)          # each [max_pos, head_dim]


def init_params(key):
    scale_init = 0.02
    keys = jax.random.split(key, 2 + N_LAYERS)
    cos_cache, sin_cache = build_rope_cache(HEAD_DIM)

    # signed permutation P with x @ (W @ P) == rotate_half(x @ W), applied per head
    half = HEAD_DIM // 2
    col = jnp.arange(DIM)
    r = col % HEAD_DIM
    src = jnp.where(r < half, col + half, col - half)
    sgn = jnp.where(r < half, -1.0, 1.0).astype(jnp.float32)

    def rot_cols(w):                    # W @ P  (exact: column permutation with sign)
        return w[:, src] * sgn[None, :]

    attn_scale = 1.0 / math.sqrt(HEAD_DIM)     # folded into Wk
    wqkv_l, wo_l, wgu_l, wd_l = [], [], [], []
    for li in range(N_LAYERS):
        ks = jax.random.split(keys[2 + li], 7)
        wq = jax.random.normal(ks[0], (DIM, DIM), jnp.float32) * scale_init
        wk = jax.random.normal(ks[1], (DIM, DIM), jnp.float32) * scale_init * attn_scale
        wv = jax.random.normal(ks[2], (DIM, DIM), jnp.float32) * scale_init
        wo = jax.random.normal(ks[3], (DIM, DIM), jnp.float32) * scale_init
        wg = jax.random.normal(ks[4], (DIM, MLP_HIDDEN), jnp.float32) * scale_init
        wu = jax.random.normal(ks[5], (DIM, MLP_HIDDEN), jnp.float32) * scale_init
        wd = jax.random.normal(ks[6], (MLP_HIDDEN, DIM), jnp.float32) * scale_init
        wqkv_l.append(jnp.concatenate([wq, rot_cols(wq), wk, rot_cols(wk), wv], axis=1))
        wo_l.append(wo)
        wgu_l.append(jnp.concatenate([wg, wu], axis=1))        # [D, 2H]
        wd_l.append(wd)

    bf = jnp.bfloat16
    return {
        "embed": jax.random.normal(keys[0], (VOCAB, DIM), jnp.float32) * scale_init,
        "lm_head": (jax.random.normal(keys[1], (DIM, VOCAB), jnp.float32) * scale_init).astype(bf),
        "final_ln": jnp.ones((1, DIM), jnp.float32),
        "cos_cache": cos_cache,
        "sin_cache": sin_cache,
        "ln1": jnp.ones((N_LAYERS, DIM), jnp.float32),
        "ln2": jnp.ones((N_LAYERS, DIM), jnp.float32),
        "wqkv": jnp.stack(wqkv_l).astype(bf),   # [L, D, 5D]
        "wo": jnp.stack(wo_l).astype(bf),       # [L, D, D]
        "wgu": jnp.stack(wgu_l).astype(bf),     # [L, D, 2H]
        "wd": jnp.stack(wd_l).astype(bf),       # [L, H, D]
    }


# TODO(synk): kv-cache (generation) path and the 8-bit Linear variant of the reference
#             are not implemented; this kernel covers the full-sequence training forward.

if __name__ == "__main__":
    key = jax.random.PRNGKey(0)
    pkey, dkey = jax.random.split(key)
    params = init_params(pkey)

    B, S = 2, 8
    input_ids = jax.random.randint(dkey, (B, S), 1, VOCAB)  # avoid pad token 0

    logits = jax.jit(lambda ids: llama_forward_pallas(params, ids))(input_ids)
    jax.block_until_ready(logits)
    assert logits.shape == (B, S, VOCAB), logits.shape
    assert bool(jnp.all(jnp.isfinite(logits)))
    print("KERNEL_OK")
</pallas_src>

<mosaic_0001>
module attributes {stable_mosaic.version = 11 : i64} {
  func.func @fused_forward_kernel(%arg0: i32, %arg1: memref<1x8x32xf32, #tpu.memory_space<vmem>>, %arg2: memref<1x8x8xf32, #tpu.memory_space<vmem>>, %arg3: memref<1x8x8xf32, #tpu.memory_space<vmem>>, %arg4: memref<2x32xf32, #tpu.memory_space<vmem>>, %arg5: memref<2x32x160xbf16, #tpu.memory_space<vmem>>, %arg6: memref<2x32x32xbf16, #tpu.memory_space<vmem>>, %arg7: memref<2x32xf32, #tpu.memory_space<vmem>>, %arg8: memref<2x32x512xbf16, #tpu.memory_space<vmem>>, %arg9: memref<2x256x32xbf16, #tpu.memory_space<vmem>>, %arg10: memref<1x32xf32, #tpu.memory_space<vmem>>, %arg11: memref<32x256xbf16, #tpu.memory_space<vmem>>, %arg12: memref<1x8x256xf32, #tpu.memory_space<vmem>>) attributes {dimension_semantics = [#tpu.dimension_semantics<parallel>], iteration_bounds = array<i64: 2>, scalar_prefetch = 0 : i64, scratch_operands = 0 : i64, tpu.core_type = #tpu.core_type<tc>, window_params = [{transform_indices = @transform_0, window_bounds = array<i64: 1, 8, 32>}, {transform_indices = @transform_1, window_bounds = array<i64: 1, 8, 8>}, {transform_indices = @transform_2, window_bounds = array<i64: 1, 8, 8>}, {pipeline_mode = #tpu.pipeline_mode<synchronous>, transform_indices = @transform_3, window_bounds = array<i64: 2, 32>}, {pipeline_mode = #tpu.pipeline_mode<synchronous>, transform_indices = @transform_4, window_bounds = array<i64: 2, 32, 160>}, {pipeline_mode = #tpu.pipeline_mode<synchronous>, transform_indices = @transform_5, window_bounds = array<i64: 2, 32, 32>}, {pipeline_mode = #tpu.pipeline_mode<synchronous>, transform_indices = @transform_6, window_bounds = array<i64: 2, 32>}, {pipeline_mode = #tpu.pipeline_mode<synchronous>, transform_indices = @transform_7, window_bounds = array<i64: 2, 32, 512>}, {pipeline_mode = #tpu.pipeline_mode<synchronous>, transform_indices = @transform_8, window_bounds = array<i64: 2, 256, 32>}, {pipeline_mode = #tpu.pipeline_mode<synchronous>, transform_indices = @transform_9, window_bounds = array<i64: 1, 32>}, {pipeline_mode = #tpu.pipeline_mode<synchronous>, transform_indices = @transform_10, window_bounds = array<i64: 32, 256>}, {transform_indices = @transform_11, window_bounds = array<i64: 1, 8, 256>}]} {
    %c0 = arith.constant 0 : index
    %c0_0 = arith.constant 0 : index
    %c0_1 = arith.constant 0 : index
    %0 = vector.load %arg1[%c0, %c0_0, %c0_1] : memref<1x8x32xf32, #tpu.memory_space<vmem>>, vector<1x8x32xf32>
    %1 = vector.shape_cast %0 : vector<1x8x32xf32> to vector<8x32xf32>
    %c0_2 = arith.constant 0 : index
    %c0_3 = arith.constant 0 : index
    %c0_4 = arith.constant 0 : index
    %2 = vector.load %arg2[%c0_2, %c0_3, %c0_4] : memref<1x8x8xf32, #tpu.memory_space<vmem>>, vector<1x8x8xf32>
    %3 = vector.shape_cast %2 : vector<1x8x8xf32> to vector<8x8xf32>
    %4 = tpu.concatenate %3, %3, %3, %3 in 1 : vector<8x8xf32>, vector<8x8xf32>, vector<8x8xf32>, vector<8x8xf32> -> vector<8x32xf32>
    %c0_5 = arith.constant 0 : index
    %c0_6 = arith.constant 0 : index
    %c0_7 = arith.constant 0 : index
    %5 = vector.load %arg3[%c0_5, %c0_6, %c0_7] : memref<1x8x8xf32, #tpu.memory_space<vmem>>, vector<1x8x8xf32>
    %6 = vector.shape_cast %5 : vector<1x8x8xf32> to vector<8x8xf32>
    %7 = tpu.concatenate %6, %6, %6, %6 in 1 : vector<8x8xf32>, vector<8x8xf32>, vector<8x8xf32>, vector<8x8xf32> -> vector<8x32xf32>
    %8 = tpu.iota {dimensions = array<i32: 0>} : vector<8x8xi32>
    %9 = tpu.iota {dimensions = array<i32: 1>} : vector<8x8xi32>
    %10 = arith.cmpi sle, %9, %8 : vector<8x8xi32>
    %cst = arith.constant 0.000000e+00 : f32
    %cst_8 = arith.constant -6.550400e+04 : f32
    %11 = vector.broadcast %cst : f32 to vector<8x8xf32>
    %12 = vector.broadcast %cst_8 : f32 to vector<8x8xf32>
    %13 = arith.select %10, %11, %12 : vector<8x8xi1>, vector<8x8xf32>
    %c0_9 = arith.constant 0 : index
    %c0_10 = arith.constant 0 : index
    %14 = vector.load %arg4[%c0_9, %c0_10] : memref<2x32xf32, #tpu.memory_space<vmem>>, vector<1x32xf32>
    %15 = vector.shape_cast %14 : vector<1x32xf32> to vector<32xf32>
    %16 = arith.mulf %1, %1 : vector<8x32xf32>
    %cst_11 = arith.constant dense<0.000000e+00> : vector<8xf32>
    %17 = vector.multi_reduction <add>, %16, %cst_11 [1] : vector<8x32xf32> to vector<8xf32>
    %18 = vector.shape_cast %17 : vector<8xf32> to vector<8x1xf32>
    %cst_12 = arith.constant 3.200000e+01 : f32
    %19 = vector.broadcast %cst_12 : f32 to vector<8x1xf32>
    %20 = arith.divf %18, %19 : vector<8x1xf32>
    %cst_13 = arith.constant 9.99999997E-7 : f32
    %21 = vector.broadcast %cst_13 : f32 to vector<8x1xf32>
    %22 = arith.addf %20, %21 : vector<8x1xf32>
    %23 = math.rsqrt %22 : vector<8x1xf32>
    %24 = vector.broadcast %23 : vector<8x1xf32> to vector<8x32xf32>
    %25 = arith.mulf %1, %24 : vector<8x32xf32>
    %26 = vector.shape_cast %15 : vector<32xf32> to vector<1x32xf32>
    %27 = vector.broadcast %26 : vector<1x32xf32> to vector<8x32xf32>
    %28 = arith.mulf %25, %27 : vector<8x32xf32>
    %29 = arith.truncf %28 : vector<8x32xf32> to vector<8x32xbf16>
    %c0_14 = arith.constant 0 : index
    %c0_15 = arith.constant 0 : index
    %c0_16 = arith.constant 0 : index
    %30 = vector.load %arg5[%c0_14, %c0_15, %c0_16] : memref<2x32x160xbf16, #tpu.memory_space<vmem>>, vector<1x32x160xbf16>
    %31 = vector.shape_cast %30 : vector<1x32x160xbf16> to vector<32x160xbf16>
    %cst_17 = arith.constant dense<0.000000e+00> : vector<8x160xf32>
    %32 = tpu.matmul %29, %31, %cst_17 {dimension_numbers = #tpu.dot_dimension_numbers<[1], [0], [0], [1], [0, 0, 1, 1], [], []>} : vector<8x32xbf16>, vector<32x160xbf16>, vector<8x160xf32> -> vector<8x160xf32>
    %33 = vector.extract_strided_slice %32 {offsets = [0, 0], sizes = [8, 32], strides = [1, 1]} : vector<8x160xf32> to vector<8x32xf32>
    %34 = arith.mulf %33, %4 : vector<8x32xf32>
    %35 = vector.extract_strided_slice %32 {offsets = [0, 32], sizes = [8, 32], strides = [1, 1]} : vector<8x160xf32> to vector<8x32xf32>
    %36 = arith.mulf %35, %7 : vector<8x32xf32>
    %37 = arith.addf %34, %36 : vector<8x32xf32>
    %38 = vector.extract_strided_slice %32 {offsets = [0, 64], sizes = [8, 32], strides = [1, 1]} : vector<8x160xf32> to vector<8x32xf32>
    %39 = arith.mulf %38, %4 : vector<8x32xf32>
    %40 = vector.extract_strided_slice %32 {offsets = [0, 96], sizes = [8, 32], strides = [1, 1]} : vector<8x160xf32> to vector<8x32xf32>
    %41 = arith.mulf %40, %7 : vector<8x32xf32>
    %42 = arith.addf %39, %41 : vector<8x32xf32>
    %43 = vector.extract_strided_slice %32 {offsets = [0, 128], sizes = [8, 32], strides = [1, 1]} : vector<8x160xf32> to vector<8x32xf32>
    %44 = vector.extract_strided_slice %37 {offsets = [0, 0], sizes = [8, 8], strides = [1, 1]} : vector<8x32xf32> to vector<8x8xf32>
    %45 = vector.extract_strided_slice %37 {offsets = [0, 8], sizes = [8, 8], strides = [1, 1]} : vector<8x32xf32> to vector<8x8xf32>
    %46 = vector.extract_strided_slice %37 {offsets = [0, 16], sizes = [8, 8], strides = [1, 1]} : vector<8x32xf32> to vector<8x8xf32>
    %47 = vector.extract_strided_slice %37 {offsets = [0, 24], sizes = [8, 8], strides = [1, 1]} : vector<8x32xf32> to vector<8x8xf32>
    %48 = vector.shape_cast %44 : vector<8x8xf32> to vector<1x8x8xf32>
    %49 = vector.shape_cast %45 : vector<8x8xf32> to vector<1x8x8xf32>
    %50 = vector.shape_cast %46 : vector<8x8xf32> to vector<1x8x8xf32>
    %51 = vector.shape_cast %47 : vector<8x8xf32> to vector<1x8x8xf32>
    %52 = tpu.concatenate %48, %49, %50, %51 in 0 : vector<1x8x8xf32>, vector<1x8x8xf32>, vector<1x8x8xf32>, vector<1x8x8xf32> -> vector<4x8x8xf32>
    %53 = arith.truncf %52 : vector<4x8x8xf32> to vector<4x8x8xbf16>
    %54 = vector.extract_strided_slice %42 {offsets = [0, 0], sizes = [8, 8], strides = [1, 1]} : vector<8x32xf32> to vector<8x8xf32>
    %55 = vector.extract_strided_slice %42 {offsets = [0, 8], sizes = [8, 8], strides = [1, 1]} : vector<8x32xf32> to vector<8x8xf32>
    %56 = vector.extract_strided_slice %42 {offsets = [0, 16], sizes = [8, 8], strides = [1, 1]} : vector<8x32xf32> to vector<8x8xf32>
    %57 = vector.extract_strided_slice %42 {offsets = [0, 24], sizes = [8, 8], strides = [1, 1]} : vector<8x32xf32> to vector<8x8xf32>
    %58 = vector.shape_cast %54 : vector<8x8xf32> to vector<1x8x8xf32>
    %59 = vector.shape_cast %55 : vector<8x8xf32> to vector<1x8x8xf32>
    %60 = vector.shape_cast %56 : vector<8x8xf32> to vector<1x8x8xf32>
    %61 = vector.shape_cast %57 : vector<8x8xf32> to vector<1x8x8xf32>
    %62 = tpu.concatenate %58, %59, %60, %61 in 0 : vector<1x8x8xf32>, vector<1x8x8xf32>, vector<1x8x8xf32>, vector<1x8x8xf32> -> vector<4x8x8xf32>
    %63 = arith.truncf %62 : vector<4x8x8xf32> to vector<4x8x8xbf16>
    %64 = vector.extract_strided_slice %43 {offsets = [0, 0], sizes = [8, 8], strides = [1, 1]} : vector<8x32xf32> to vector<8x8xf32>
    %65 = vector.extract_strided_slice %43 {offsets = [0, 8], sizes = [8, 8], strides = [1, 1]} : vector<8x32xf32> to vector<8x8xf32>
    %66 = vector.extract_strided_slice %43 {offsets = [0, 16], sizes = [8, 8], strides = [1, 1]} : vector<8x32xf32> to vector<8x8xf32>
    %67 = vector.extract_strided_slice %43 {offsets = [0, 24], sizes = [8, 8], strides = [1, 1]} : vector<8x32xf32> to vector<8x8xf32>
    %68 = vector.shape_cast %64 : vector<8x8xf32> to vector<1x8x8xf32>
    %69 = vector.shape_cast %65 : vector<8x8xf32> to vector<1x8x8xf32>
    %70 = vector.shape_cast %66 : vector<8x8xf32> to vector<1x8x8xf32>
    %71 = vector.shape_cast %67 : vector<8x8xf32> to vector<1x8x8xf32>
    %72 = tpu.concatenate %68, %69, %70, %71 in 0 : vector<1x8x8xf32>, vector<1x8x8xf32>, vector<1x8x8xf32>, vector<1x8x8xf32> -> vector<4x8x8xf32>
    %73 = arith.truncf %72 : vector<4x8x8xf32> to vector<4x8x8xbf16>
    "tpu.trace_start"() <{level = 10 : i32, message = "hqd,hkd->hqk"}> : () -> ()
    %cst_18 = arith.constant dense<0.000000e+00> : vector<4x8x8xf32>
    %74 = tpu.matmul %53, %63, %cst_18 {dimension_numbers = #tpu.dot_dimension_numbers<[2], [2], [1], [1], [0, 0, 0, 1, 1, 1], [0], [0]>} : vector<4x8x8xbf16>, vector<4x8x8xbf16>, vector<4x8x8xf32> -> vector<4x8x8xf32>
    "tpu.trace_stop"() : () -> ()
    %75 = vector.shape_cast %13 : vector<8x8xf32> to vector<1x8x8xf32>
    %76 = vector.broadcast %75 : vector<1x8x8xf32> to vector<4x8x8xf32>
    %77 = arith.addf %74, %76 : vector<4x8x8xf32>
    %cst_19 = arith.constant dense<0xFF800000> : vector<4x8xf32>
    %78 = vector.multi_reduction <maximumf>, %77, %cst_19 [2] : vector<4x8x8xf32> to vector<4x8xf32>
    %79 = vector.shape_cast %78 : vector<4x8xf32> to vector<4x8x1xf32>
    %80 = vector.broadcast %79 : vector<4x8x1xf32> to vector<4x8x8xf32>
    %81 = arith.subf %77, %80 : vector<4x8x8xf32>
    %82 = math.exp %81 : vector<4x8x8xf32>
    %cst_20 = arith.constant dense<0.000000e+00> : vector<4x8xf32>
    %83 = vector.multi_reduction <add>, %82, %cst_20 [2] : vector<4x8x8xf32> to vector<4x8xf32>
    %84 = vector.shape_cast %83 : vector<4x8xf32> to vector<4x8x1xf32>
    %85 = tpu.reciprocal %84 {approx = true} : vector<4x8x1xf32> -> vector<4x8x1xf32>
    %86 = vector.broadcast %85 : vector<4x8x1xf32> to vector<4x8x8xf32>
    %87 = arith.mulf %82, %86 : vector<4x8x8xf32>
    %88 = arith.truncf %87 : vector<4x8x8xf32> to vector<4x8x8xbf16>
    "tpu.trace_start"() <{level = 10 : i32, message = "hqk,hkd->hqd"}> : () -> ()
    %cst_21 = arith.constant dense<0.000000e+00> : vector<4x8x8xf32>
    %89 = tpu.matmul %88, %73, %cst_21 {dimension_numbers = #tpu.dot_dimension_numbers<[2], [1], [1], [2], [0, 0, 0, 1, 1, 2], [0], [0]>} : vector<4x8x8xbf16>, vector<4x8x8xbf16>, vector<4x8x8xf32> -> vector<4x8x8xf32>
    "tpu.trace_stop"() : () -> ()
    %90 = vector.extract_strided_slice %89 {offsets = [0, 0, 0], sizes = [1, 8, 8], strides = [1, 1, 1]} : vector<4x8x8xf32> to vector<1x8x8xf32>
    %91 = vector.shape_cast %90 : vector<1x8x8xf32> to vector<8x8xf32>
    %92 = vector.extract_strided_slice %89 {offsets = [1, 0, 0], sizes = [1, 8, 8], strides = [1, 1, 1]} : vector<4x8x8xf32> to vector<1x8x8xf32>
    %93 = vector.shape_cast %92 : vector<1x8x8xf32> to vector<8x8xf32>
    %94 = vector.extract_strided_slice %89 {offsets = [2, 0, 0], sizes = [1, 8, 8], strides = [1, 1, 1]} : vector<4x8x8xf32> to vector<1x8x8xf32>
    %95 = vector.shape_cast %94 : vector<1x8x8xf32> to vector<8x8xf32>
    %96 = vector.extract_strided_slice %89 {offsets = [3, 0, 0], sizes = [1, 8, 8], strides = [1, 1, 1]} : vector<4x8x8xf32> to vector<1x8x8xf32>
    %97 = vector.shape_cast %96 : vector<1x8x8xf32> to vector<8x8xf32>
    %98 = tpu.concatenate %91, %93, %95, %97 in 1 : vector<8x8xf32>, vector<8x8xf32>, vector<8x8xf32>, vector<8x8xf32> -> vector<8x32xf32>
    %99 = arith.truncf %98 : vector<8x32xf32> to vector<8x32xbf16>
    %c0_22 = arith.constant 0 : index
    %c0_23 = arith.constant 0 : index
    %c0_24 = arith.constant 0 : index
    %100 = vector.load %arg6[%c0_22, %c0_23, %c0_24] : memref<2x32x32xbf16, #tpu.memory_space<vmem>>, vector<1x32x32xbf16>
    %101 = vector.shape_cast %100 : vector<1x32x32xbf16> to vector<32x32xbf16>
    %cst_25 = arith.constant dense<0.000000e+00> : vector<8x32xf32>
    %102 = tpu.matmul %99, %101, %cst_25 {dimension_numbers = #tpu.dot_dimension_numbers<[1], [0], [0], [1], [0, 0, 1, 1], [], []>} : vector<8x32xbf16>, vector<32x32xbf16>, vector<8x32xf32> -> vector<8x32xf32>
    %103 = arith.addf %1, %102 : vector<8x32xf32>
    %c0_26 = arith.constant 0 : index
    %c0_27 = arith.constant 0 : index
    %104 = vector.load %arg7[%c0_26, %c0_27] : memref<2x32xf32, #tpu.memory_space<vmem>>, vector<1x32xf32>
    %105 = vector.shape_cast %104 : vector<1x32xf32> to vector<32xf32>
    %106 = arith.mulf %103, %103 : vector<8x32xf32>
    %cst_28 = arith.constant dense<0.000000e+00> : vector<8xf32>
    %107 = vector.multi_reduction <add>, %106, %cst_28 [1] : vector<8x32xf32> to vector<8xf32>
    %108 = vector.shape_cast %107 : vector<8xf32> to vector<8x1xf32>
    %cst_29 = arith.constant 3.200000e+01 : f32
    %109 = vector.broadcast %cst_29 : f32 to vector<8x1xf32>
    %110 = arith.divf %108, %109 : vector<8x1xf32>
    %cst_30 = arith.constant 9.99999997E-7 : f32
    %111 = vector.broadcast %cst_30 : f32 to vector<8x1xf32>
    %112 = arith.addf %110, %111 : vector<8x1xf32>
    %113 = math.rsqrt %112 : vector<8x1xf32>
    %114 = vector.broadcast %113 : vector<8x1xf32> to vector<8x32xf32>
    %115 = arith.mulf %103, %114 : vector<8x32xf32>
    %116 = vector.shape_cast %105 : vector<32xf32> to vector<1x32xf32>
    %117 = vector.broadcast %116 : vector<1x32xf32> to vector<8x32xf32>
    %118 = arith.mulf %115, %117 : vector<8x32xf32>
    %119 = arith.truncf %118 : vector<8x32xf32> to vector<8x32xbf16>
    %c0_31 = arith.constant 0 : index
    %c0_32 = arith.constant 0 : index
    %c0_33 = arith.constant 0 : index
    %120 = vector.load %arg8[%c0_31, %c0_32, %c0_33] : memref<2x32x512xbf16, #tpu.memory_space<vmem>>, vector<1x32x512xbf16>
    %121 = vector.shape_cast %120 : vector<1x32x512xbf16> to vector<32x512xbf16>
    %cst_34 = arith.constant dense<0.000000e+00> : vector<8x512xf32>
    %122 = tpu.matmul %119, %121, %cst_34 {dimension_numbers = #tpu.dot_dimension_numbers<[1], [0], [0], [1], [0, 0, 1, 1], [], []>} : vector<8x32xbf16>, vector<32x512xbf16>, vector<8x512xf32> -> vector<8x512xf32>
    %123 = vector.extract_strided_slice %122 {offsets = [0, 0], sizes = [8, 256], strides = [1, 1]} : vector<8x512xf32> to vector<8x256xf32>
    %124 = vector.extract_strided_slice %122 {offsets = [0, 256], sizes = [8, 256], strides = [1, 1]} : vector<8x512xf32> to vector<8x256xf32>
    %125 = arith.negf %123 : vector<8x256xf32>
    %126 = math.exp %125 : vector<8x256xf32>
    %cst_35 = arith.constant 1.000000e+00 : f32
    %127 = vector.broadcast %cst_35 : f32 to vector<8x256xf32>
    %128 = arith.addf %127, %126 : vector<8x256xf32>
    %129 = arith.divf %127, %128 : vector<8x256xf32>
    %130 = arith.mulf %123, %129 : vector<8x256xf32>
    %131 = arith.mulf %130, %124 : vector<8x256xf32>
    %132 = arith.truncf %131 : vector<8x256xf32> to vector<8x256xbf16>
    %c0_36 = arith.constant 0 : index
    %c0_37 = arith.constant 0 : index
    %c0_38 = arith.constant 0 : index
    %133 = vector.load %arg9[%c0_36, %c0_37, %c0_38] : memref<2x256x32xbf16, #tpu.memory_space<vmem>>, vector<1x256x32xbf16>
    %134 = vector.shape_cast %133 : vector<1x256x32xbf16> to vector<256x32xbf16>
    %cst_39 = arith.constant dense<0.000000e+00> : vector<8x32xf32>
    %135 = tpu.matmul %132, %134, %cst_39 {dimension_numbers = #tpu.dot_dimension_numbers<[1], [0], [0], [1], [0, 0, 1, 1], [], []>} : vector<8x256xbf16>, vector<256x32xbf16>, vector<8x32xf32> -> vector<8x32xf32>
    %136 = arith.addf %103, %135 : vector<8x32xf32>
    %c1 = arith.constant 1 : index
    %c0_40 = arith.constant 0 : index
    %137 = vector.load %arg4[%c1, %c0_40] : memref<2x32xf32, #tpu.memory_space<vmem>>, vector<1x32xf32>
    %138 = vector.shape_cast %137 : vector<1x32xf32> to vector<32xf32>
    %139 = arith.mulf %136, %136 : vector<8x32xf32>
    %cst_41 = arith.constant dense<0.000000e+00> : vector<8xf32>
    %140 = vector.multi_reduction <add>, %139, %cst_41 [1] : vector<8x32xf32> to vector<8xf32>
    %141 = vector.shape_cast %140 : vector<8xf32> to vector<8x1xf32>
    %cst_42 = arith.constant 3.200000e+01 : f32
    %142 = vector.broadcast %cst_42 : f32 to vector<8x1xf32>
    %143 = arith.divf %141, %142 : vector<8x1xf32>
    %cst_43 = arith.constant 9.99999997E-7 : f32
    %144 = vector.broadcast %cst_43 : f32 to vector<8x1xf32>
    %145 = arith.addf %143, %144 : vector<8x1xf32>
    %146 = math.rsqrt %145 : vector<8x1xf32>
    %147 = vector.broadcast %146 : vector<8x1xf32> to vector<8x32xf32>
    %148 = arith.mulf %136, %147 : vector<8x32xf32>
    %149 = vector.shape_cast %138 : vector<32xf32> to vector<1x32xf32>
    %150 = vector.broadcast %149 : vector<1x32xf32> to vector<8x32xf32>
    %151 = arith.mulf %148, %150 : vector<8x32xf32>
    %152 = arith.truncf %151 : vector<8x32xf32> to vector<8x32xbf16>
    %c1_44 = arith.constant 1 : index
    %c0_45 = arith.constant 0 : index
    %c0_46 = arith.constant 0 : index
    %153 = vector.load %arg5[%c1_44, %c0_45, %c0_46] : memref<2x32x160xbf16, #tpu.memory_space<vmem>>, vector<1x32x160xbf16>
    %154 = vector.shape_cast %153 : vector<1x32x160xbf16> to vector<32x160xbf16>
    %cst_47 = arith.constant dense<0.000000e+00> : vector<8x160xf32>
    %155 = tpu.matmul %152, %154, %cst_47 {dimension_numbers = #tpu.dot_dimension_numbers<[1], [0], [0], [1], [0, 0, 1, 1], [], []>} : vector<8x32xbf16>, vector<32x160xbf16>, vector<8x160xf32> -> vector<8x160xf32>
    %156 = vector.extract_strided_slice %155 {offsets = [0, 0], sizes = [8, 32], strides = [1, 1]} : vector<8x160xf32> to vector<8x32xf32>
    %157 = arith.mulf %156, %4 : vector<8x32xf32>
    %158 = vector.extract_strided_slice %155 {offsets = [0, 32], sizes = [8, 32], strides = [1, 1]} : vector<8x160xf32> to vector<8x32xf32>
    %159 = arith.mulf %158, %7 : vector<8x32xf32>
    %160 = arith.addf %157, %159 : vector<8x32xf32>
    %161 = vector.extract_strided_slice %155 {offsets = [0, 64], sizes = [8, 32], strides = [1, 1]} : vector<8x160xf32> to vector<8x32xf32>
    %162 = arith.mulf %161, %4 : vector<8x32xf32>
    %163 = vector.extract_strided_slice %155 {offsets = [0, 96], sizes = [8, 32], strides = [1, 1]} : vector<8x160xf32> to vector<8x32xf32>
    %164 = arith.mulf %163, %7 : vector<8x32xf32>
    %165 = arith.addf %162, %164 : vector<8x32xf32>
    %166 = vector.extract_strided_slice %155 {offsets = [0, 128], sizes = [8, 32], strides = [1, 1]} : vector<8x160xf32> to vector<8x32xf32>
    %167 = vector.extract_strided_slice %160 {offsets = [0, 0], sizes = [8, 8], strides = [1, 1]} : vector<8x32xf32> to vector<8x8xf32>
    %168 = vector.extract_strided_slice %160 {offsets = [0, 8], sizes = [8, 8], strides = [1, 1]} : vector<8x32xf32> to vector<8x8xf32>
    %169 = vector.extract_strided_slice %160 {offsets = [0, 16], sizes = [8, 8], strides = [1, 1]} : vector<8x32xf32> to vector<8x8xf32>
    %170 = vector.extract_strided_slice %160 {offsets = [0, 24], sizes = [8, 8], strides = [1, 1]} : vector<8x32xf32> to vector<8x8xf32>
    %171 = vector.shape_cast %167 : vector<8x8xf32> to vector<1x8x8xf32>
    %172 = vector.shape_cast %168 : vector<8x8xf32> to vector<1x8x8xf32>
    %173 = vector.shape_cast %169 : vector<8x8xf32> to vector<1x8x8xf32>
    %174 = vector.shape_cast %170 : vector<8x8xf32> to vector<1x8x8xf32>
    %175 = tpu.concatenate %171, %172, %173, %174 in 0 : vector<1x8x8xf32>, vector<1x8x8xf32>, vector<1x8x8xf32>, vector<1x8x8xf32> -> vector<4x8x8xf32>
    %176 = arith.truncf %175 : vector<4x8x8xf32> to vector<4x8x8xbf16>
    %177 = vector.extract_strided_slice %165 {offsets = [0, 0], sizes = [8, 8], strides = [1, 1]} : vector<8x32xf32> to vector<8x8xf32>
    %178 = vector.extract_strided_slice %165 {offsets = [0, 8], sizes = [8, 8], strides = [1, 1]} : vector<8x32xf32> to vector<8x8xf32>
    %179 = vector.extract_strided_slice %165 {offsets = [0, 16], sizes = [8, 8], strides = [1, 1]} : vector<8x32xf32> to vector<8x8xf32>
    %180 = vector.extract_strided_slice %165 {offsets = [0, 24], sizes = [8, 8], strides = [1, 1]} : vector<8x32xf32> to vector<8x8xf32>
    %181 = vector.shape_cast %177 : vector<8x8xf32> to vector<1x8x8xf32>
    %182 = vector.shape_cast %178 : vector<8x8xf32> to vector<1x8x8xf32>
    %183 = vector.shape_cast %179 : vector<8x8xf32> to vector<1x8x8xf32>
    %184 = vector.shape_cast %180 : vector<8x8xf32> to vector<1x8x8xf32>
    %185 = tpu.concatenate %181, %182, %183, %184 in 0 : vector<1x8x8xf32>, vector<1x8x8xf32>, vector<1x8x8xf32>, vector<1x8x8xf32> -> vector<4x8x8xf32>
    %186 = arith.truncf %185 : vector<4x8x8xf32> to vector<4x8x8xbf16>
    %187 = vector.extract_strided_slice %166 {offsets = [0, 0], sizes = [8, 8], strides = [1, 1]} : vector<8x32xf32> to vector<8x8xf32>
    %188 = vector.extract_strided_slice %166 {offsets = [0, 8], sizes = [8, 8], strides = [1, 1]} : vector<8x32xf32> to vector<8x8xf32>
    %189 = vector.extract_strided_slice %166 {offsets = [0, 16], sizes = [8, 8], strides = [1, 1]} : vector<8x32xf32> to vector<8x8xf32>
    %190 = vector.extract_strided_slice %166 {offsets = [0, 24], sizes = [8, 8], strides = [1, 1]} : vector<8x32xf32> to vector<8x8xf32>
    %191 = vector.shape_cast %187 : vector<8x8xf32> to vector<1x8x8xf32>
    %192 = vector.shape_cast %188 : vector<8x8xf32> to vector<1x8x8xf32>
    %193 = vector.shape_cast %189 : vector<8x8xf32> to vector<1x8x8xf32>
    %194 = vector.shape_cast %190 : vector<8x8xf32> to vector<1x8x8xf32>
    %195 = tpu.concatenate %191, %192, %193, %194 in 0 : vector<1x8x8xf32>, vector<1x8x8xf32>, vector<1x8x8xf32>, vector<1x8x8xf32> -> vector<4x8x8xf32>
    %196 = arith.truncf %195 : vector<4x8x8xf32> to vector<4x8x8xbf16>
    "tpu.trace_start"() <{level = 10 : i32, message = "hqd,hkd->hqk"}> : () -> ()
    %cst_48 = arith.constant dense<0.000000e+00> : vector<4x8x8xf32>
    %197 = tpu.matmul %176, %186, %cst_48 {dimension_numbers = #tpu.dot_dimension_numbers<[2], [2], [1], [1], [0, 0, 0, 1, 1, 1], [0], [0]>} : vector<4x8x8xbf16>, vector<4x8x8xbf16>, vector<4x8x8xf32> -> vector<4x8x8xf32>
    "tpu.trace_stop"() : () -> ()
    %198 = vector.shape_cast %13 : vector<8x8xf32> to vector<1x8x8xf32>
    %199 = vector.broadcast %198 : vector<1x8x8xf32> to vector<4x8x8xf32>
    %200 = arith.addf %197, %199 : vector<4x8x8xf32>
    %cst_49 = arith.constant dense<0xFF800000> : vector<4x8xf32>
    %201 = vector.multi_reduction <maximumf>, %200, %cst_49 [2] : vector<4x8x8xf32> to vector<4x8xf32>
    %202 = vector.shape_cast %201 : vector<4x8xf32> to vector<4x8x1xf32>
    %203 = vector.broadcast %202 : vector<4x8x1xf32> to vector<4x8x8xf32>
    %204 = arith.subf %200, %203 : vector<4x8x8xf32>
    %205 = math.exp %204 : vector<4x8x8xf32>
    %cst_50 = arith.constant dense<0.000000e+00> : vector<4x8xf32>
    %206 = vector.multi_reduction <add>, %205, %cst_50 [2] : vector<4x8x8xf32> to vector<4x8xf32>
    %207 = vector.shape_cast %206 : vector<4x8xf32> to vector<4x8x1xf32>
    %208 = tpu.reciprocal %207 {approx = true} : vector<4x8x1xf32> -> vector<4x8x1xf32>
    %209 = vector.broadcast %208 : vector<4x8x1xf32> to vector<4x8x8xf32>
    %210 = arith.mulf %205, %209 : vector<4x8x8xf32>
    %211 = arith.truncf %210 : vector<4x8x8xf32> to vector<4x8x8xbf16>
    "tpu.trace_start"() <{level = 10 : i32, message = "hqk,hkd->hqd"}> : () -> ()
    %cst_51 = arith.constant dense<0.000000e+00> : vector<4x8x8xf32>
    %212 = tpu.matmul %211, %196, %cst_51 {dimension_numbers = #tpu.dot_dimension_numbers<[2], [1], [1], [2], [0, 0, 0, 1, 1, 2], [0], [0]>} : vector<4x8x8xbf16>, vector<4x8x8xbf16>, vector<4x8x8xf32> -> vector<4x8x8xf32>
    "tpu.trace_stop"() : () -> ()
    %213 = vector.extract_strided_slice %212 {offsets = [0, 0, 0], sizes = [1, 8, 8], strides = [1, 1, 1]} : vector<4x8x8xf32> to vector<1x8x8xf32>
    %214 = vector.shape_cast %213 : vector<1x8x8xf32> to vector<8x8xf32>
    %215 = vector.extract_strided_slice %212 {offsets = [1, 0, 0], sizes = [1, 8, 8], strides = [1, 1, 1]} : vector<4x8x8xf32> to vector<1x8x8xf32>
    %216 = vector.shape_cast %215 : vector<1x8x8xf32> to vector<8x8xf32>
    %217 = vector.extract_strided_slice %212 {offsets = [2, 0, 0], sizes = [1, 8, 8], strides = [1, 1, 1]} : vector<4x8x8xf32> to vector<1x8x8xf32>
    %218 = vector.shape_cast %217 : vector<1x8x8xf32> to vector<8x8xf32>
    %219 = vector.extract_strided_slice %212 {offsets = [3, 0, 0], sizes = [1, 8, 8], strides = [1, 1, 1]} : vector<4x8x8xf32> to vector<1x8x8xf32>
    %220 = vector.shape_cast %219 : vector<1x8x8xf32> to vector<8x8xf32>
    %221 = tpu.concatenate %214, %216, %218, %220 in 1 : vector<8x8xf32>, vector<8x8xf32>, vector<8x8xf32>, vector<8x8xf32> -> vector<8x32xf32>
    %222 = arith.truncf %221 : vector<8x32xf32> to vector<8x32xbf16>
    %c1_52 = arith.constant 1 : index
    %c0_53 = arith.constant 0 : index
    %c0_54 = arith.constant 0 : index
    %223 = vector.load %arg6[%c1_52, %c0_53, %c0_54] : memref<2x32x32xbf16, #tpu.memory_space<vmem>>, vector<1x32x32xbf16>
    %224 = vector.shape_cast %223 : vector<1x32x32xbf16> to vector<32x32xbf16>
    %cst_55 = arith.constant dense<0.000000e+00> : vector<8x32xf32>
    %225 = tpu.matmul %222, %224, %cst_55 {dimension_numbers = #tpu.dot_dimension_numbers<[1], [0], [0], [1], [0, 0, 1, 1], [], []>} : vector<8x32xbf16>, vector<32x32xbf16>, vector<8x32xf32> -> vector<8x32xf32>
    %226 = arith.addf %136, %225 : vector<8x32xf32>
    %c1_56 = arith.constant 1 : index
    %c0_57 = arith.constant 0 : index
    %227 = vector.load %arg7[%c1_56, %c0_57] : memref<2x32xf32, #tpu.memory_space<vmem>>, vector<1x32xf32>
    %228 = vector.shape_cast %227 : vector<1x32xf32> to vector<32xf32>
    %229 = arith.mulf %226, %226 : vector<8x32xf32>
    %cst_58 = arith.constant dense<0.000000e+00> : vector<8xf32>
    %230 = vector.multi_reduction <add>, %229, %cst_58 [1] : vector<8x32xf32> to vector<8xf32>
    %231 = vector.shape_cast %230 : vector<8xf32> to vector<8x1xf32>
    %cst_59 = arith.constant 3.200000e+01 : f32
    %232 = vector.broadcast %cst_59 : f32 to vector<8x1xf32>
    %233 = arith.divf %231, %232 : vector<8x1xf32>
    %cst_60 = arith.constant 9.99999997E-7 : f32
    %234 = vector.broadcast %cst_60 : f32 to vector<8x1xf32>
    %235 = arith.addf %233, %234 : vector<8x1xf32>
    %236 = math.rsqrt %235 : vector<8x1xf32>
    %237 = vector.broadcast %236 : vector<8x1xf32> to vector<8x32xf32>
    %238 = arith.mulf %226, %237 : vector<8x32xf32>
    %239 = vector.shape_cast %228 : vector<32xf32> to vector<1x32xf32>
    %240 = vector.broadcast %239 : vector<1x32xf32> to vector<8x32xf32>
    %241 = arith.mulf %238, %240 : vector<8x32xf32>
    %242 = arith.truncf %241 : vector<8x32xf32> to vector<8x32xbf16>
    %c1_61 = arith.constant 1 : index
    %c0_62 = arith.constant 0 : index
    %c0_63 = arith.constant 0 : index
    %243 = vector.load %arg8[%c1_61, %c0_62, %c0_63] : memref<2x32x512xbf16, #tpu.memory_space<vmem>>, vector<1x32x512xbf16>
    %244 = vector.shape_cast %243 : vector<1x32x512xbf16> to vector<32x512xbf16>
    %cst_64 = arith.constant dense<0.000000e+00> : vector<8x512xf32>
    %245 = tpu.matmul %242, %244, %cst_64 {dimension_numbers = #tpu.dot_dimension_numbers<[1], [0], [0], [1], [0, 0, 1, 1], [], []>} : vector<8x32xbf16>, vector<32x512xbf16>, vector<8x512xf32> -> vector<8x512xf32>
    %246 = vector.extract_strided_slice %245 {offsets = [0, 0], sizes = [8, 256], strides = [1, 1]} : vector<8x512xf32> to vector<8x256xf32>
    %247 = vector.extract_strided_slice %245 {offsets = [0, 256], sizes = [8, 256], strides = [1, 1]} : vector<8x512xf32> to vector<8x256xf32>
    %248 = arith.negf %246 : vector<8x256xf32>
    %249 = math.exp %248 : vector<8x256xf32>
    %cst_65 = arith.constant 1.000000e+00 : f32
    %250 = vector.broadcast %cst_65 : f32 to vector<8x256xf32>
    %251 = arith.addf %250, %249 : vector<8x256xf32>
    %252 = arith.divf %250, %251 : vector<8x256xf32>
    %253 = arith.mulf %246, %252 : vector<8x256xf32>
    %254 = arith.mulf %253, %247 : vector<8x256xf32>
    %255 = arith.truncf %254 : vector<8x256xf32> to vector<8x256xbf16>
    %c1_66 = arith.constant 1 : index
    %c0_67 = arith.constant 0 : index
    %c0_68 = arith.constant 0 : index
    %256 = vector.load %arg9[%c1_66, %c0_67, %c0_68] : memref<2x256x32xbf16, #tpu.memory_space<vmem>>, vector<1x256x32xbf16>
    %257 = vector.shape_cast %256 : vector<1x256x32xbf16> to vector<256x32xbf16>
    %cst_69 = arith.constant dense<0.000000e+00> : vector<8x32xf32>
    %258 = tpu.matmul %255, %257, %cst_69 {dimension_numbers = #tpu.dot_dimension_numbers<[1], [0], [0], [1], [0, 0, 1, 1], [], []>} : vector<8x256xbf16>, vector<256x32xbf16>, vector<8x32xf32> -> vector<8x32xf32>
    %259 = arith.addf %226, %258 : vector<8x32xf32>
    %c0_70 = arith.constant 0 : index
    %c0_71 = arith.constant 0 : index
    %260 = vector.load %arg10[%c0_70, %c0_71] : memref<1x32xf32, #tpu.memory_space<vmem>>, vector<1x32xf32>
    %261 = arith.mulf %259, %259 : vector<8x32xf32>
    %cst_72 = arith.constant dense<0.000000e+00> : vector<8xf32>
    %262 = vector.multi_reduction <add>, %261, %cst_72 [1] : vector<8x32xf32> to vector<8xf32>
    %263 = vector.shape_cast %262 : vector<8xf32> to vector<8x1xf32>
    %cst_73 = arith.constant 3.200000e+01 : f32
    %264 = vector.broadcast %cst_73 : f32 to vector<8x1xf32>
    %265 = arith.divf %263, %264 : vector<8x1xf32>
    %cst_74 = arith.constant 9.99999997E-7 : f32
    %266 = vector.broadcast %cst_74 : f32 to vector<8x1xf32>
    %267 = arith.addf %265, %266 : vector<8x1xf32>
    %268 = math.rsqrt %267 : vector<8x1xf32>
    %269 = vector.broadcast %268 : vector<8x1xf32> to vector<8x32xf32>
    %270 = arith.mulf %259, %269 : vector<8x32xf32>
    %271 = vector.broadcast %260 : vector<1x32xf32> to vector<8x32xf32>
    %272 = arith.mulf %270, %271 : vector<8x32xf32>
    %273 = arith.truncf %272 : vector<8x32xf32> to vector<8x32xbf16>
    %c0_75 = arith.constant 0 : index
    %c0_76 = arith.constant 0 : index
    %274 = vector.load %arg11[%c0_75, %c0_76] : memref<32x256xbf16, #tpu.memory_space<vmem>>, vector<32x256xbf16>
    %cst_77 = arith.constant dense<0.000000e+00> : vector<8x256xf32>
    %275 = tpu.matmul %273, %274, %cst_77 {dimension_numbers = #tpu.dot_dimension_numbers<[1], [0], [0], [1], [0, 0, 1, 1], [], []>} : vector<8x32xbf16>, vector<32x256xbf16>, vector<8x256xf32> -> vector<8x256xf32>
    %276 = vector.shape_cast %275 : vector<8x256xf32> to vector<1x8x256xf32>
    %c0_78 = arith.constant 0 : index
    %c0_79 = arith.constant 0 : index
    %c0_80 = arith.constant 0 : index
    %277 = vector.load %arg12[%c0_78, %c0_79, %c0_80] : memref<1x8x256xf32, #tpu.memory_space<vmem>>, vector<1x8x256xf32>
    tpu.vector_store %arg12[%c0_78, %c0_79, %c0_80], %276 {strides = array<i32>} : memref<1x8x256xf32, #tpu.memory_space<vmem>>, vector<1x8x256xf32>,
    return
  }
  func.func @transform_0(%arg0: i32) -> (i32, i32, i32) {
    %c0_i32 = arith.constant 0 : i32
    %c0_i32_0 = arith.constant 0 : i32
    %c0_i32_1 = arith.constant 0 : i32
    return %arg0, %c0_i32, %c0_i32_0 : i32, i32, i32
  }
  func.func @transform_1(%arg0: i32) -> (i32, i32, i32) {
    %c0_i32 = arith.constant 0 : i32
    %c0_i32_0 = arith.constant 0 : i32
    %c0_i32_1 = arith.constant 0 : i32
    return %arg0, %c0_i32, %c0_i32_0 : i32, i32, i32
  }
  func.func @transform_2(%arg0: i32) -> (i32, i32, i32) {
    %c0_i32 = arith.constant 0 : i32
    %c0_i32_0 = arith.constant 0 : i32
    %c0_i32_1 = arith.constant 0 : i32
    return %arg0, %c0_i32, %c0_i32_0 : i32, i32, i32
  }
  func.func @transform_3(%arg0: i32) -> (i32, i32) {
    %c0_i32 = arith.constant 0 : i32
    %c0_i32_0 = arith.constant 0 : i32
    %c0_i32_1 = arith.constant 0 : i32
    return %c0_i32, %c0_i32_0 : i32, i32
  }
  func.func @transform_4(%arg0: i32) -> (i32, i32, i32) {
    %c0_i32 = arith.constant 0 : i32
    %c0_i32_0 = arith.constant 0 : i32
    %c0_i32_1 = arith.constant 0 : i32
    %c0_i32_2 = arith.constant 0 : i32
    return %c0_i32, %c0_i32_0, %c0_i32_1 : i32, i32, i32
  }
  func.func @transform_5(%arg0: i32) -> (i32, i32, i32) {
    %c0_i32 = arith.constant 0 : i32
    %c0_i32_0 = arith.constant 0 : i32
    %c0_i32_1 = arith.constant 0 : i32
    %c0_i32_2 = arith.constant 0 : i32
    return %c0_i32, %c0_i32_0, %c0_i32_1 : i32, i32, i32
  }
  func.func @transform_6(%arg0: i32) -> (i32, i32) {
    %c0_i32 = arith.constant 0 : i32
    %c0_i32_0 = arith.constant 0 : i32
    %c0_i32_1 = arith.constant 0 : i32
    return %c0_i32, %c0_i32_0 : i32, i32
  }
  func.func @transform_7(%arg0: i32) -> (i32, i32, i32) {
    %c0_i32 = arith.constant 0 : i32
    %c0_i32_0 = arith.constant 0 : i32
    %c0_i32_1 = arith.constant 0 : i32
    %c0_i32_2 = arith.constant 0 : i32
    return %c0_i32, %c0_i32_0, %c0_i32_1 : i32, i32, i32
  }
  func.func @transform_8(%arg0: i32) -> (i32, i32, i32) {
    %c0_i32 = arith.constant 0 : i32
    %c0_i32_0 = arith.constant 0 : i32
    %c0_i32_1 = arith.constant 0 : i32
    %c0_i32_2 = arith.constant 0 : i32
    return %c0_i32, %c0_i32_0, %c0_i32_1 : i32, i32, i32
  }
  func.func @transform_9(%arg0: i32) -> (i32, i32) {
    %c0_i32 = arith.constant 0 : i32
    %c0_i32_0 = arith.constant 0 : i32
    %c0_i32_1 = arith.constant 0 : i32
    return %c0_i32, %c0_i32_0 : i32, i32
  }
  func.func @transform_10(%arg0: i32) -> (i32, i32) {
    %c0_i32 = arith.constant 0 : i32
    %c0_i32_0 = arith.constant 0 : i32
    %c0_i32_1 = arith.constant 0 : i32
    return %c0_i32, %c0_i32_0 : i32, i32
  }
  func.func @transform_11(%arg0: i32) -> (i32, i32, i32) {
    %c0_i32 = arith.constant 0 : i32
    %c0_i32_0 = arith.constant 0 : i32
    %c0_i32_1 = arith.constant 0 : i32
    return %arg0, %c0_i32, %c0_i32_0 : i32, i32, i32
  }
}

</mosaic_0001>

<bundles_post_ra>
// kernel: _lambda_.1
= control target key start
LH: loop header
LB: loop body
LE: loop exit
PB: predicated region body
PF: predicated region fallthrough
CT: control target
= control target key end

     0   :  { %s3317_s0 = inlined_call_operand.vmem [shape: f32[2,8,32], index: 0, kind: input, shape index: {}]   ;;  %s3318_s1 = inlined_call_operand.vmem [shape: f32[2,8,8], index: 1, kind: input, shape index: {}]   ;;  %s3319_s2 = inlined_call_operand.vmem [shape: f32[2,8,8], index: 2, kind: input, shape index: {}]   ;;  %s3320_s3 = inlined_call_operand.vmem [shape: f32[2,32], index: 3, kind: input, shape index: {}, may-alias: {3,6}]   ;;  %s3321_s4 = inlined_call_operand.vmem [shape: bf16[2,32,160], index: 4, kind: input, shape index: {}]   ;;  %s3322_s5 = inlined_call_operand.vmem [shape: bf16[2,32,32], index: 5, kind: input, shape index: {}]   ;;  %s3323_s6 = inlined_call_operand.vmem [shape: f32[2,32], index: 6, kind: input, shape index: {}, may-alias: {3,6}]   ;;  %s3324_s7 = inlined_call_operand.vmem [shape: bf16[2,32,512], index: 7, kind: input, shape index: {}]   ;;  %s3325_s8 = inlined_call_operand.hbm [shape: bf16[2,256,32], index: 8, kind: input, shape index: {}]   ;;  %s3326_s9 = inlined_call_operand.vmem [shape: f32[1,32], index: 9, kind: input, shape index: {}]   ;;  %s3327_s10 = inlined_call_operand.vmem [shape: bf16[32,256], index: 10, kind: input, shape index: {}]   ;;  %s3328_s11 = inlined_call_operand.hbm [shape: f32[2,8,256], index: 11, kind: output, shape index: {}]  }
   0x1   :  { %3345 = sst [smem:[#allocation8_spill]] %s3317_s0 }
   0x2   :  { %3346 = sst [smem:[#allocation9_spill]] %s3318_s1 }
   0x3   :  { %3347 = sst [smem:[#allocation10_spill]] %s3319_s2 }
   0x4   :  { %3348 = sst [smem:[#allocation11_spill]] %s3325_s8 }
   0x5   :  { %16 = vsyncpa [#allocation3], 0 }
   0x6   :  { %17 = vsyncpa [#allocation4], 0 }
   0x7   :  { %19 = vsyncpa [#allocation4 + $0x1], 0  ;;  %s2818_s17 = smov 0   ;;  %s2820_s18 = smov 0  }
   0x8   :  { %s2822_s19 = smov 0   ;;  %s2824_s20 = smov 0  }
   0x9 LB: > { %s2839_s21 = sadd.s32 4294967295, %s2742_s20   ;;  %s2130_s22 = sadd.s32 4294967294, %s2742_s20   ;;  %s2742_s20 = sphi %s2824_s20, %s3366_s20   ;;  %s2738_s19 = sphi %s2822_s19, %s3365_s19   ;;  %s2734_s18 = sphi %s2820_s18, %s3364_s18   ;;  %s2730_s17 = sphi %s2818_s17, %s3363_s17  }
   0xa   : > { %s2843_s23 = sadd.s32 1, %s2742_s20   ;;  %s278_s24 = sadd.s32 1, %s2738_s19 }
   0xb   : > { %s275_s25 = ssub.s32 %s2742_s20, %s2843_s23  ;;  %p288_p0 = scmp.ne.s32.totalorder %s2738_s19, %s2734_s18 }
   0xc   : > { %p276_p1 = scmp.eq.s32.totalorder %s275_s25, 0  ;;  %p289_p2 = scmp.eq.s32.totalorder %s2839_s21, 1 }
   0xd   : > { %p294_p3 = scmp.ne.s32.totalorder %s2734_s18, %s2730_s17  ;;  %p295_p4 = scmp.eq.s32.totalorder %s2130_s22, 1 }
   0xe   : > { %s2854_s26 = scalar_select %p276_p1, %s2738_s19, %s278_s24  }
   0xf   : > { %p2856_p5 = por %p289_p2, %p288_p0  ;;  %p2860_p6 = por %p295_p4, %p294_p3 }
  0x10   : > { %p2131_p7 = scmp.ge.s32.totalorder %s2742_s20, 1  ;;  %p302_p8 = scmp.lt.s32.totalorder %s2742_s20, 3 }
  0x11   : > { %p2532_p9 = scmp.eq.s32.totalorder %s2839_s21, 0  ;;  %s3351_s8 = sld [smem:[#allocation11_spill]] }
  0x12   : > { %p303_p10 = pnand %p2131_p7, %p302_p8  ;;  %s2744_s13 = smov [#allocation2]  }
  0x13   : > { %s330_s14 = sshll.u32 %s2744_s13, 4  ;;  %s2745_s15 = smov 64   ;;  %s331_s14 = int_to_ptr.vmem [resolvable:$true] %s330_s14 }
  0x14   : > { %p2524_p11 = pneg %p303_p10  ;;  %s2746_s16 = smov 4  }
  0x15   : > { %373 = sbr.rel (%p303_p10) target bundleno = 4040 (0xfc8), region = 64 }
  0x16   : > { %p2525_p12 = pnand %p2532_p9, %p2524_p11 }
  0x17   : > { %s328_s12 = sshll.u32 %s3351_s8, 4  ;;  %s329_s12 = int_to_ptr.hbm [resolvable:$true] %s328_s12 }
  0x18   : > { %2527 = dma.hbm_to_vmem [thread:$0]  (!%p2525_p12), %s329_s12, 4096, %s331_s14, [#allocation3], %s2745_s15, %s2745_s15, %s2746_s16  }
  0x1a   : > { %2721 = dma.done.wait (%p2532_p9), [#allocation3], 4096  }
  0x1b   : > { %2723 = vsyncadd (%p2532_p9), [#allocation3], 4294963200  ;;  %p421_p13 = scmp.lt.s32.totalorder %s2839_s21, 1  ;;  %s3352_s0 = sld [smem:[#allocation8_spill]]  ;;  %vm474_vm0 = vcmask 261120   ;;  %v2750_v5 = vmov 32.0  }
  0x1c   : > { %s3353_s2 = sld [smem:[#allocation10_spill]]  ;;  %s3331_s25 = smov 8   ;;  %2586 = vrcp.f32 %v2750_v5  ;;  %v2150_v9 = vld [vmem:[%s3321_s4 + $0x10] sm:$0xf]  ;;  %v2456_v10 = vld [vmem:[%s3321_s4 + $0x14] sm:$0xf0] }
  0x1d   : > { %s422_s22 = scalar_select %p421_p13, %s2839_s21, 1  ;;  %v2455_v11 = vld [vmem:[%s3321_s4 + $0x14] sm:$0xf]  ;;  %v2151_v12 = vor.u32 %v2456_v10, %v2150_v9  ;;  %v2152_v13 = vld [vmem:[%s3321_s4 + $0x18] sm:$0xf0]  ;;  %vm446_vm2 = vcmask 64512  }
  0x1e   : > { %s3354_s1 = sld [smem:[#allocation9_spill]]  ;;  %s3329_s8 = smov 24   ;;  %v2142_v14 = vld [vmem:[%s3321_s4] sm:$0xf]  ;;  %v2454_v15 = vld [vmem:[%s3321_s4 + $0x4] sm:$0xf0]  ;;  %v2155_v16 = vor.u32 %v2455_v11, %v2152_v13 }
  0x1f   : > { %s2137_s24 = sshll.u32 %s422_s22, 3  ;;  %s3333_s22 = smov 16   ;;  %v2453_v17 = vld [vmem:[%s3321_s4 + $0x4] sm:$0xf]  ;;  %v2144_v18 = vld [vmem:[%s3321_s4 + $0x8] sm:$0xf0]  ;;  %534 = vmatpush.bf16.msra.mxu0 %v2151_v12  ;;  %v2143_v20 = vor.u32 %v2454_v15, %v2142_v14 }
  0x20   : > { %547 = vmatpush.bf16.msra.mxu1 %v2155_v16  ;;  %v2147_v21 = vor.u32 %v2453_v17, %v2144_v18  ;;  %vm448_vm3 = vcmask 130048   ;;  %vm450_vm4 = vcmask 195584   ;;  %v2581_v43 = vld [vmem:[%s3320_s3] ss:$0 sm:$0xff]  ;;  %s2752_s14 = smov 32   ;;  %s3343_s15 = smov 96  }
  0x21   : > { %s424_s30 = scalar_lea.vmem %s3352_s0, %s2137_s24  ;;  %s3337_s29 = smov 104   ;;  %vm768_vm8 = vcmask 1043456  }
  0x22   : > { %s432_s12 = scalar_lea.vmem %s3353_s2, %s2137_s24  ;;  %v2887_v0 = vld [vmem:[%s424_s30] sm:$0xff]  ;;  %v2587_v6 = vpop.eup %2586  ;;  %s3355_s30 = smov 16  }
  0x23   : > { %v2889_v1 = vld [vmem:[%s432_s12] sm:$0xff]  ;;  %v473_v3 = vmul.f32 %v2887_v0, %v2887_v0  ;;  %v479_v7 = vmul.f32 32.0, %v2587_v6  ;;  %535 = vmatpush.bf16.msra.mxu0 %v2143_v20  ;;  %vm483_vm1 = vweird.f32 %v2587_v6  ;;  %s3356_s13 = smov 8   ;;  %s3357_s12 = smov 24  }
  0x24   : > { %s428_s16 = scalar_lea.vmem %s3354_s1, %s2137_s24  ;;  %457 = vrot.lane.b32.xlu1 %v2889_v1, %s3333_s22  ;;  %548 = vmatpush.bf16.msra.mxu1 %v2147_v21  ;;  %s3339_s24 = smov 120  }
  0x25   : > { %v435_v2 = vld [vmem:[%s428_s16] sm:$0xff]  ;;  %v475_v4 = vsel %vm474_vm0, %v473_v3, 0.0  ;;  %v480_v8 = vsub.f32 1.0, %v479_v7  ;;  %s3341_s16 = smov 112  }
  0x26   : > { %437 = vrot.lane.b32.xlu2 %v435_v2, %s3331_s25  ;;  %476 = vadd.xlane.f32.xlu0 %v475_v4 }
  0x27   : > { %v481_v19 = vmul.f32 %v2587_v6, %v480_v8 }
  0x29   : > { %v482_v22 = vadd.f32 %v2587_v6, %v481_v19 }
  0x2b   : > { %v2927_v25 = vsel %vm483_vm1, %v2587_v6, %v482_v22 }
  0x2c   : > { %460 = vrot.lane.b32.xlu1 %v2889_v1, %s3329_s8 }
  0x2e   : > { %440 = vrot.lane.b32.xlu2 %v435_v2, %s3333_s22  ;;  %s3335_s22 = smov 64  }
  0x34   : > { %443 = vrot.lane.b32.xlu1 %v435_v2, %s3329_s8  ;;  %s418_s8 = sand.u32 1, %s2734_s18  }
  0x3a   : > { %454 = vrot.lane.b32.xlu0 %v2889_v1, %s3331_s25  ;;  %s3362_s25 = smov 64  }
  0x80   : > { %v438_v24 = vpop.permute.xlu2 %437 }
  0x81   : > { %v447_v30 = vsel %vm446_vm2, %v435_v2, %v438_v24 }
  0x88   : > { %v441_v31 = vpop.permute.xlu2 %440 }
  0x89   : > { %v449_v32 = vsel %vm448_vm3, %v447_v30, %v441_v31 }
  0x96   : > { %v458_v23 = vpop.permute.xlu1 %457 }
  0x99   : > { %v477_v26 = vpop.xlane.xlu0 %476 }
  0x9a   : > { %v485_v27 = vmul.f32 %v2927_v25, %v477_v26 }
  0x9c   : > { %v486_v28 = vadd.f32 1e-06, %v485_v27 }
  0x9e   : > { %v461_v29 = vpop.permute.xlu1 %460  ;;  %2588 = vrsqrt.f32 %v486_v28  ;;  %vm493_vm6 = vweird.f32 %v486_v28 }
  0xa4   : > { %v2589_v33 = vpop.eup %2588 }
  0xa5   : > { %v488_v34 = vmul.f32 %v2589_v33, %v486_v28  ;;  %vm494_vm5 = vweird.f32 %v2589_v33 }
  0xa6   : > { %v444_v35 = vpop.permute.xlu1 %443  ;;  %vm495_vm7 = vmor %vm493_vm6, %vm494_vm5 }
  0xa7   : > { %v2933_v36 = vsel %vm450_vm4, %v449_v32, %v444_v35  ;;  %v489_v37 = vmul.f32 %v2589_v33, %v488_v34  ;;  %v466_v35 = vlaneseq }
  0xa8   : > { %566 = vrot.lane.b32.xlu1 %v2933_v36, %s3335_s22 }
  0xa9   : > { %v490_v38 = vmul.f32 0.5, %v489_v37  ;;  %v467_v37 = vshrl.u32 %v466_v35, 7 }
  0xab   : > { %v491_v39 = vsub.f32 1.5, %v490_v38  ;;  %v469_v38 = vand.u32 127, %v466_v35 }
  0xac   : > { %v455_v40 = vpop.permute.xlu0 %454 }
  0xad   : > { %v492_v41 = vmul.f32 %v2589_v33, %v491_v39  ;;  %v463_v42 = vsel %vm446_vm2, %v2889_v1, %v455_v40  ;;  %vm470_vm9 = vcmp.le.s32.totalorder %v469_v38, %v467_v37  ;;  %v2757_v39 = vmov -65504.0  }
  0xae   : > { %v464_v44 = vsel %vm448_vm3, %v463_v42, %v458_v23  ;;  %v2983_v40 = vsel %vm470_vm9, 0.0, %v2757_v39 }
  0xaf   : > { %v496_v45 = vsel %vm495_vm7, %v2589_v33, %v492_v41  ;;  %v465_v46 = vsel %vm450_vm4, %v464_v44, %v461_v29 }
  0xb0   : > { %v497_v47 = vmul.f32 %v496_v45, %v2887_v0  ;;  %556 = vrot.lane.b32.xlu0 %v465_v46, %s2752_s14  ;;  %570 = vrot.lane.b32.xlu2 %v465_v46, %s3343_s15  ;;  %s3360_s14 = smov 120  }
  0xb2   : > { %v499_v48 = vmul.f32 %v2581_v43, %v497_v47 }
  0xb4   : > { %v500_v49 = vpack.c.bf16 %v499_v48, %v499_v48 }
  0xb6   : > { %2156 = vmatmul.msk.bf16.vlgmr.msra.gmra.mxu0 %vm474_vm0, %v500_v49  ;;  %2157 = vmatmul.msk.bf16.vlgmr.msra.gmra.mxu1 %vm474_vm0, %v500_v49 }
 0x10a   : > { %v2948_v50 = vpop.permute.xlu2 %570 }
 0x11a   : > { %v2958_v58 = vpop.permute.xlu1 %566 }
 0x122   : > { %v2954_v54 = vpop.permute.xlu0 %556 }
 0x133   : > { %v537_v51 = vpop.f32.mrf.mxu0  ;;  %v2950_v52 = vpop.f32.mrf.mxu1 }
 0x134   : > { %v573_v53 = vmul.f32 %v2948_v50, %v537_v51  ;;  %v559_v57 = vmul.f32 %v2954_v54, %v537_v51  ;;  %v569_v59 = vmul.f32 %v2958_v58, %v537_v51  ;;  %v554_v62 = vmul.f32 %v537_v51, %v2933_v36 }
 0x135   : > { %v617_v23 = vpack.c.bf16 %v2950_v52, %v2950_v52 }
 0x136   : > { %575 = vrot.lane.b32.xlu2 %v573_v53, %s3343_s15 }
 0x137   : > { %v770_v27 = vsel %vm768_vm8, %v617_v23, 0 }
 0x13b   : > { %v539_v55 = vpop.f32.mrf.mxu0  ;;  %v552_v56 = vpop.f32.mrf.mxu1 }
 0x13e   : > { %561 = vrot.lane.b32.xlu2 %v559_v57, %s3343_s15  ;;  %s3358_s15 = smov 96  }
 0x190   : > { %v576_v60 = vpop.permute.xlu2 %575 }
 0x191   : > { %v578_v61 = vadd.f32 %v576_v60, %v569_v59 }
 0x193   : > { %597 = vrot.lane.b32.xlu0 %v578_v61, %s3341_s16  ;;  %594 = vrot.lane.b32.xlu1 %v578_v61, %s3339_s24  ;;  %v603_v14 = vpack.c.bf16 %v578_v61, %v578_v61 }
 0x195   : > { %v622_v15 = vunpack.c.l.b16 %v603_v14 }
 0x197   : > { %v623_v16 = vpack.c.b16 %v622_v15, %v622_v15 }
 0x198   : > { %v562_v63 = vpop.permute.xlu2 %561 }
 0x199   : > { %v564_v1 = vadd.f32 %v562_v63, %v554_v62 }
 0x19b   : > { %600 = vrot.lane.b32.xlu1 %v578_v61, %s3337_s29  ;;  %580 = vrot.lane.b32.xlu0 %v564_v1, %s3339_s24  ;;  %v589_v28 = vpack.c.bf16 %v564_v1, %v564_v1 }
 0x1a3   : > { %583 = vrot.lane.b32.xlu0 %v564_v1, %s3341_s16 }
 0x205   : > { %v598_v2 = vpop.permute.xlu0 %597  ;;  %v595_v3 = vpop.permute.xlu1 %594 }
 0x206   : > { %v605_v4 = vpack.c.bf16 %v598_v2, %v598_v2  ;;  %v604_v5 = vpack.c.bf16 %v595_v3, %v595_v3 }
 0x208   : > { %v670_v6 = vunpack.c.l.b16 %v605_v4  ;;  %v646_v7 = vunpack.c.l.b16 %v604_v5 }
 0x20a   : > { %v671_v8 = vpack.c.b16 %v670_v6, %v670_v6  ;;  %v647_v9 = vpack.c.b16 %v646_v7, %v646_v7 }
 0x20c   : > { %672 = vrot.lane.b32.xlu1 %v671_v8, %s3335_s22  ;;  %648 = vrot.lane.b32.xlu2 %v647_v9, %s3335_s22 }
 0x20d   : > { %v601_v10 = vpop.permute.xlu1 %600  ;;  %v581_v19 = vpop.permute.xlu0 %580 }
 0x20e   : > { %v606_v11 = vpack.c.bf16 %v601_v10, %v601_v10  ;;  %v590_v20 = vpack.c.bf16 %v581_v19, %v581_v19 }
 0x210   : > { %v694_v12 = vunpack.c.l.b16 %v606_v11 }
 0x212   : > { %v695_v13 = vpack.c.b16 %v694_v12, %v694_v12 }
 0x214   : > { %696 = vrot.lane.b32.xlu2 %v695_v13, %s3335_s22  ;;  %586 = vrot.lane.b32.xlu1 %v564_v1, %s3337_s29 }
 0x215   : > { %v584_v31 = vpop.permute.xlu0 %583 }
 0x216   : > { %v591_v32 = vpack.c.bf16 %v584_v31, %v584_v31 }
 0x21c   : > { %624 = vrot.lane.b32.xlu2 %v623_v16, %s3335_s22  ;;  %s3361_s22 = smov 104  }
 0x266   : > { %v649_v17 = vpop.permute.xlu2 %648 }
 0x267   : > { %v654_v18 = vsel %vm446_vm2, %v649_v17, 0 }
 0x268   : > { %663 = vmatpush.bf16.xpose.msra.mxu3 %v654_v18 }
 0x26e   : > { %v697_v21 = vpop.permute.xlu2 %696 }
 0x26f   : > { %2159 = vmatmul.msk.bf16.vlgmr.msra.gmra.mxu3 %vm446_vm2, %v590_v20  ;;  %v702_v22 = vsel %vm446_vm2, %v697_v21, 0 }
 0x270   : > { %711 = vmatpush.bf16.xpose.msrb.mxu1 %v702_v22 }
 0x276   : > { %v625_v24 = vpop.permute.xlu2 %624 }
 0x277   : > { %v630_v26 = vsel %vm446_vm2, %v625_v24, 0 }
 0x278   : > { %639 = vmatpush.bf16.xpose.msra.mxu2 %v630_v26 }
 0x27e   : > { %v673_v29 = vpop.permute.xlu1 %672 }
 0x27f   : > { %2158 = vmatmul.msk.bf16.vlgmr.msra.gmra.mxu2 %vm446_vm2, %v589_v28  ;;  %v678_v30 = vsel %vm446_vm2, %v673_v29, 0 }
 0x280   : > { %779 = vmatpush.bf16.msrb.mxu2 %v770_v27  ;;  %687 = vmatpush.bf16.xpose.msrb.mxu0 %v678_v30 }
 0x286   : > { %v587_v33 = vpop.permute.xlu1 %586 }
 0x287   : > { %v592_v34 = vpack.c.bf16 %v587_v33, %v587_v33  ;;  %2160 = vmatmul.msk.bf16.vlgmr.msrb.gmra.mxu0 %vm446_vm2, %v591_v32 }
 0x289   : > { %2161 = vmatmul.msk.bf16.vlgmr.msrb.gmra.mxu1 %vm446_vm2, %v592_v34 }
 0x2f2   : > { %v665_v41 = vpop.f32.mrf.mxu3 }
 0x2f3   : > { %v666_v42 = vadd.f32 %v665_v41, %v2983_v40 }
 0x2f5   : > { %v720_v43 = vsel %vm446_vm2, %v666_v42, -inf }
 0x2f6   : > { %721 = vmax.xlane.f32.xlu0 %v720_v43 }
 0x2fa   : > { %v667_v44 = vpop.f32.mrf.mxu3 }
 0x302   : > { %v641_v45 = vpop.f32.mrf.mxu2 }
 0x303   : > { %v642_v46 = vadd.f32 %v641_v45, %v2983_v40 }
 0x304   : > { %v689_v47 = vpop.f32.mrf.mxu0 }
 0x305   : > { %v690_v48 = vadd.f32 %v689_v47, %v2983_v40  ;;  %v717_v49 = vsel %vm446_vm2, %v642_v46, -inf }
 0x306   : > { %v713_v51 = vpop.f32.mrf.mxu1  ;;  %718 = vmax.xlane.f32.xlu0 %v717_v49 }
 0x307   : > { %v714_v53 = vadd.f32 %v713_v51, %v2983_v40  ;;  %v723_v55 = vsel %vm446_vm2, %v690_v48, -inf }
 0x308   : > { %724 = vmax.xlane.f32.xlu1 %v723_v55 }
 0x309   : > { %v726_v56 = vsel %vm446_vm2, %v714_v53, -inf }
 0x30a   : > { %727 = vmax.xlane.f32.xlu2 %v726_v56  ;;  %v643_v57 = vpop.f32.mrf.mxu2  ;;  %v2458_v56 = vld [vmem:[%s3322_s5 + $0x8] sm:$0xff] }
 0x30b   : > { %883 = vmatpush.bf16.msra.mxu2 %v2458_v56  ;;  %v2457_v57 = vld [vmem:[%s3322_s5] sm:$0xff]  ;;  %v2472_v56 = vld [vmem:[#allocation2 + $0x28] sm:$0xff] }
 0x30c   : > { %v691_v59 = vpop.f32.mrf.mxu0 }
 0x30e   : > { %v715_v60 = vpop.f32.mrf.mxu1 }
 0x30f   : > { %884 = vmatpush.bf16.msra.mxu2 %v2457_v57  ;;  %v2478_v57 = vld [vmem:[#allocation2 + $0x58] sm:$0xff] }
 0x321   : > { %608 = vrot.lane.b32.xlu1 %v2950_v52, %s3339_s24  ;;  %s2517_s24 = sshll.u32 %s2839_s21, 4 }
 0x369   : > { %v722_v61 = vpop.xlane.xlu0 %721 }
 0x36a   : > { %v730_v7 = vsub.f32 %v666_v42, %v722_v61 }
 0x36c   : > { %v735_v10 = vmul.f32 1.442695, %v730_v7 }
 0x379   : > { %v719_v62 = vpop.xlane.xlu0 %718 }
 0x37a   : > { %v729_v63 = vsub.f32 %v642_v46, %v719_v62 }
 0x37b   : > { %v725_v1 = vpop.xlane.xlu1 %724 }
 0x37c   : > { %v733_v2 = vmul.f32 1.442695, %v729_v63  ;;  %v731_v3 = vsub.f32 %v690_v48, %v725_v1 }
 0x37d   : > { %v728_v4 = vpop.xlane.xlu2 %727 }
 0x37e   : > { %2590 = vpow2.f32 %v733_v2  ;;  %v737_v5 = vmul.f32 1.442695, %v731_v3  ;;  %v732_v6 = vsub.f32 %v714_v53, %v728_v4 }
 0x380   : > { %2592 = vpow2.f32 %v737_v5  ;;  %v739_v8 = vmul.f32 1.442695, %v732_v6 }
 0x382   : > { %2594 = vpow2.f32 %v739_v8  ;;  %v2193_v8 = vld [vmem:[%s3324_s7 + $0x20] sm:$0xf] }
 0x383   : > { %2596 = vpow2.f32 %v735_v10 }
 0x384   : > { %v2591_v9 = vpop.eup %2590 }
 0x385   : > { %v741_v11 = vsel %vm446_vm2, %v2591_v9, 0.0 }
 0x386   : > { %v2593_v12 = vpop.eup %2592  ;;  %742 = vadd.xlane.f32.xlu1 %v741_v11  ;;  %v2195_v11 = vld [vmem:[%s3324_s7 + $0x30] sm:$0xf0] }
 0x387   : > { %v747_v13 = vsel %vm446_vm2, %v2593_v12, 0.0 }
 0x388   : > { %v2595_v14 = vpop.eup %2594  ;;  %748 = vadd.xlane.f32.xlu0 %v747_v13  ;;  %v2466_v13 = vld [vmem:[%s3324_s7 + $0x34] sm:$0xf0] }
 0x389   : > { %v750_v15 = vsel %vm446_vm2, %v2595_v14, 0.0  ;;  %v2597_v16 = vpop.eup %2596 }
 0x38a   : > { %751 = vadd.xlane.f32.xlu2 %v750_v15  ;;  %v744_v17 = vsel %vm446_vm2, %v2597_v16, 0.0 }
 0x392   : > { %745 = vadd.xlane.f32.xlu2 %v744_v17  ;;  %v2203_v17 = vld [vmem:[%s3324_s7 + $0x38] sm:$0xf0] }
 0x393   : > { %v609_v18 = vpop.permute.xlu1 %608 }
 0x394   : > { %v618_v19 = vpack.c.bf16 %v609_v18, %v609_v18 }
 0x396   : > { %v789_v20 = vsel %vm768_vm8, %v618_v19, 0  ;;  %v2177_v19 = vld [vmem:[%s3324_s7] sm:$0xf] }
 0x397   : > { %798 = vmatpush.bf16.msrb.mxu3 %v789_v20  ;;  %v2461_v20 = vld [vmem:[%s3324_s7 + $0xc] sm:$0xf0] }
 0x39c   : > { %611 = vrot.lane.b32.xlu0 %v2950_v52, %s3341_s16  ;;  %s3359_s16 = smov 112  }
 0x3aa   : > { %614 = vrot.lane.b32.xlu2 %v2950_v52, %s3337_s29  ;;  %s2136_s29 = sshll.u32 %s418_s8, 4 }
 0x3f9   : > { %v743_v21 = vpop.xlane.xlu1 %742 }
 0x3fa   : > { %2598 = vrcp.f32 %v743_v21  ;;  %v2459_v21 = vld [vmem:[%s3324_s7 + $0x4] sm:$0xf] }
 0x3fb   : > { %v749_v26 = vpop.xlane.xlu0 %748 }
 0x3fc   : > { %2600 = vrcp.f32 %v749_v26  ;;  %v2462_v26 = vld [vmem:[%s3324_s7 + $0x14] sm:$0xf0] }
 0x3fd   : > { %v752_v22 = vpop.xlane.xlu2 %751 }
 0x3fe   : > { %2602 = vrcp.f32 %v752_v22  ;;  %v2178_v22 = vor.u32 %v2461_v20, %v2177_v19 }
 0x400   : > { %v2599_v23 = vpop.eup %2598 }
 0x401   : > { %v757_v24 = vmul.f32 %v2599_v23, %v2591_v9  ;;  %v2465_v9 = vld [vmem:[%s3324_s7 + $0x2c] sm:$0xf0]  ;;  %v2179_v23 = vld [vmem:[%s3324_s7 + $0x10] sm:$0xf0] }
 0x402   : > { %v2601_v29 = vpop.eup %2600  ;;  %v2194_v10 = vor.u32 %v2465_v9, %v2193_v8 }
 0x403   : > { %v761_v27 = vpack.c.bf16 %v757_v24, %v757_v24  ;;  %v759_v37 = vmul.f32 %v2601_v29, %v2593_v12  ;;  %v2201_v12 = vld [vmem:[%s3324_s7 + $0x28] sm:$0xf]  ;;  %v2460_v29 = vld [vmem:[%s3324_s7 + $0xc] sm:$0xf] }
 0x404   : > { %v2603_v30 = vpop.eup %2602  ;;  %v2202_v15 = vor.u32 %v2466_v13, %v2201_v12  ;;  %969 = vmatpush.bf16.msra.mxu3 %v2194_v10  ;;  %v2185_v24 = vld [vmem:[%s3324_s7 + $0x8] sm:$0xf] }
 0x405   : > { %2162 = vmatmul.msk.bf16.vlgmr.msrb.gmra.mxu2 %vm446_vm2, %v761_v27  ;;  %v746_v28 = vpop.xlane.xlu2 %745  ;;  %v760_v34 = vmul.f32 %v2603_v30, %v2595_v14  ;;  %v763_v44 = vpack.c.bf16 %v759_v37, %v759_v37  ;;  %v2182_v27 = vor.u32 %v2459_v21, %v2179_v23  ;;  %v2187_v30 = vld [vmem:[%s3324_s7 + $0x18] sm:$0xf0] }
 0x406   : > { %2604 = vrcp.f32 %v746_v28  ;;  %v2186_v28 = vor.u32 %v2462_v26, %v2185_v24 }
 0x407   : > { %v764_v43 = vpack.c.bf16 %v760_v34, %v760_v34 }
 0x408   : > { %970 = vmatpush.bf16.msra.mxu3 %v2178_v22 }
 0x40c   : > { %v2605_v31 = vpop.eup %2604 }
 0x40d   : > { %v758_v32 = vmul.f32 %v2605_v31, %v2597_v16  ;;  %v615_v33 = vpop.permute.xlu2 %614  ;;  %v2464_v16 = vld [vmem:[%s3324_s7 + $0x2c] sm:$0xf]  ;;  %v2190_v31 = vor.u32 %v2460_v29, %v2187_v30 }
 0x40e   : > { %v620_v52 = vpack.c.bf16 %v615_v33, %v615_v33  ;;  %v612_v35 = vpop.permute.xlu0 %611  ;;  %v2206_v18 = vor.u32 %v2464_v16, %v2203_v17 }
 0x40f   : > { %v619_v38 = vpack.c.bf16 %v612_v35, %v612_v35  ;;  %v762_v39 = vpack.c.bf16 %v758_v32, %v758_v32 }
 0x410   : > { %v827_v41 = vsel %vm768_vm8, %v620_v52, 0  ;;  %1008 = vmatpush.bf16.msrb.mxu2 %v2206_v18 }
 0x411   : > { %v808_v42 = vsel %vm768_vm8, %v619_v38, 0  ;;  %2163 = vmatmul.msk.bf16.vlgmr.msrb.gmra.mxu3 %vm446_vm2, %v762_v39  ;;  %836 = vmatpush.bf16.msra.mxu1 %v827_v41 }
 0x412   : > { %817 = vmatpush.bf16.msra.mxu0 %v808_v42  ;;  %v2582_v42 = vld [vmem:[%s3323_s6] ss:$0 sm:$0xff] }
 0x414   : > { %2165 = vmatmul.msk.bf16.vlgmr.msra.gmra.mxu1 %vm446_vm2, %v764_v43  ;;  %1009 = vmatpush.bf16.msrb.mxu2 %v2190_v31 }
 0x415   : > { %2164 = vmatmul.msk.bf16.vlgmr.msra.gmra.mxu0 %vm446_vm2, %v763_v44  ;;  %995 = vmatpush.bf16.msrb.mxu1 %v2202_v15 }
 0x419   : > { %996 = vmatpush.bf16.msrb.mxu1 %v2186_v28 }
 0x488   : > { %v781_v45 = vpop.f32.mrf.mxu2 }
 0x490   : > { %v783_v46 = vpop.f32.mrf.mxu2 }
 0x491   : > { %v838_v47 = vpop.f32.mrf.mxu1 }
 0x492   : > { %v819_v48 = vpop.f32.mrf.mxu0 }
 0x493   : > { %847 = vrot.lane.b32.xlu2 %v819_v48, %s3355_s30  ;;  %v2481_v48 = vld [vmem:[#allocation2 + $0x70] sm:$0xff] }
 0x494   : > { %v800_v49 = vpop.f32.mrf.mxu3 }
 0x495   : > { %843 = vrot.lane.b32.xlu0 %v800_v49, %s3356_s13  ;;  %v2474_v49 = vld [vmem:[#allocation2 + $0x38] sm:$0xff] }
 0x496   : > { %1187 = vmatpush.bf16.msrb.mxu3 %v2474_v49 }
 0x499   : > { %v840_v51 = vpop.f32.mrf.mxu1 }
 0x49a   : > { %v821_v53 = vpop.f32.mrf.mxu0  ;;  %v2480_v51 = vld [vmem:[#allocation2 + $0x68] sm:$0xff] }
 0x49b   : > { %v2473_v53 = vld [vmem:[#allocation2 + $0x30] sm:$0xff] }
 0x49c   : > { %v802_v55 = vpop.f32.mrf.mxu3  ;;  %1188 = vmatpush.bf16.msrb.mxu3 %v2473_v53 }
 0x49d   : > { %851 = vrot.lane.b32.xlu0 %v838_v47, %s3357_s12  ;;  %v2482_v47 = vld [vmem:[#allocation2 + $0x78] sm:$0xff]  ;;  %v2479_v55 = vld [vmem:[#allocation2 + $0x60] sm:$0xff] }
 0x4a0   : > { %1189 = vmatpush.bf16.msrb.mxu3 %v2472_v56 }
 0x4ed   : > { %v848_v61 = vpop.permute.xlu2 %847 }
 0x507   : > { %v844_v59 = vpop.permute.xlu0 %843 }
 0x508   : > { %v854_v60 = vsel %vm446_vm2, %v781_v45, %v844_v59  ;;  %v2471_v59 = vld [vmem:[#allocation2 + $0x20] sm:$0xff] }
 0x509   : > { %v855_v63 = vsel %vm448_vm3, %v854_v60, %v848_v61  ;;  %1190 = vmatpush.bf16.msrb.mxu3 %v2471_v59  ;;  %v2477_v60 = vld [vmem:[#allocation2 + $0x50] sm:$0xff]  ;;  %v2470_v61 = vld [vmem:[#allocation2 + $0x18] sm:$0xff] }
 0x50a   : > { %v2486_v59 = vld [vmem:[%s3321_s4 + $0x34] sm:$0xf0] }
 0x50d   : > { %1191 = vmatpush.bf16.msrb.mxu3 %v2470_v61  ;;  %v2293_v61 = vld [vmem:[%s3321_s4 + $0x38] sm:$0xf0] }
 0x50f   : > { %v852_v62 = vpop.permute.xlu0 %851 }
 0x510   : > { %v856_v1 = vsel %vm450_vm4, %v855_v63, %v852_v62  ;;  %v2476_v62 = vld [vmem:[#allocation2 + $0x48] sm:$0xff]  ;;  %v2469_v63 = vld [vmem:[#allocation2 + $0x10] sm:$0xff] }
 0x511   : > { %v857_v2 = vpack.c.bf16 %v856_v1, %v856_v1  ;;  %1192 = vmatpush.bf16.msrb.mxu3 %v2469_v63  ;;  %v2475_v1 = vld [vmem:[#allocation2 + $0x40] sm:$0xff] }
 0x512   : > { %v2283_v63 = vld [vmem:[%s3321_s4 + $0x20] sm:$0xf] }
 0x513   : > { %2174 = vmatmul.msk.bf16.vlgmr.msra.gmra.mxu2 %vm474_vm0, %v857_v2 }
 0x596   : > { %v886_v3 = vpop.f32.mrf.mxu2 }
 0x597   : > { %v3024_v4 = vadd.f32 %v886_v3, %v2887_v0  ;;  %v2463_v0 = vld [vmem:[%s3324_s7 + $0x24] sm:$0xf] }
 0x598   : > { %v2198_v14 = vor.u32 %v2463_v0, %v2195_v11 }
 0x599   : > { %v892_v5 = vmul.f32 %v3024_v4, %v3024_v4 }
 0x59a   : > { %982 = vmatpush.bf16.msrb.mxu0 %v2198_v14 }
 0x59b   : > { %v893_v6 = vsel %vm474_vm0, %v892_v5, 0.0 }
 0x59c   : > { %894 = vadd.xlane.f32.xlu2 %v893_v6  ;;  %v2468_v6 = vld [vmem:[#allocation2 + $0x8] sm:$0xff] }
 0x59d   : > { %1193 = vmatpush.bf16.msrb.mxu3 %v2468_v6 }
 0x59e   : > { %v888_v7 = vpop.f32.mrf.mxu2  ;;  %983 = vmatpush.bf16.msrb.mxu0 %v2182_v27 }
 0x59f   : > { %v2467_v7 = vld [vmem:[#allocation2] sm:$0xff] }
 0x5a1   : > { %1194 = vmatpush.bf16.msrb.mxu3 %v2467_v7 }
 0x5a2   : > { %1200 = vmatpush.bf16.msra.mxu0 %v2482_v47 }
 0x5a6   : > { %1201 = vmatpush.bf16.msra.mxu0 %v2481_v48 }
 0x5aa   : > { %1202 = vmatpush.bf16.msra.mxu0 %v2480_v51 }
 0x5ae   : > { %1203 = vmatpush.bf16.msra.mxu0 %v2479_v55 }
 0x5b2   : > { %1204 = vmatpush.bf16.msra.mxu0 %v2478_v57  ;;  %v2291_v57 = vld [vmem:[%s3321_s4 + $0x30] sm:$0xf] }
 0x5b6   : > { %1205 = vmatpush.bf16.msra.mxu0 %v2477_v60  ;;  %v2292_v60 = vor.u32 %v2486_v59, %v2291_v57 }
 0x5b8   : > { %1269 = vmatpush.bf16.msra.mxu1 %v2292_v60 }
 0x5ba   : > { %1206 = vmatpush.bf16.msra.mxu0 %v2476_v62 }
 0x5be   : > { %1207 = vmatpush.bf16.msra.mxu0 %v2475_v1  ;;  %v2484_v1 = vld [vmem:[%s3321_s4 + $0x24] sm:$0xf0] }
 0x60f   : > { %v895_v32 = vpop.xlane.xlu2 %894 }
 0x610   : > { %v896_v33 = vmul.f32 %v895_v32, %v2927_v25 }
 0x612   : > { %v897_v34 = vadd.f32 1e-06, %v896_v33 }
 0x614   : > { %2606 = vrsqrt.f32 %v897_v34  ;;  %vm904_vm11 = vweird.f32 %v897_v34 }
 0x61a   : > { %v2607_v52 = vpop.eup %2606 }
 0x61b   : > { %v899_v35 = vmul.f32 %v2607_v52, %v897_v34  ;;  %vm905_vm10 = vweird.f32 %v2607_v52 }
 0x61c   : > { %vm906_vm12 = vmor %vm904_vm11, %vm905_vm10 }
 0x61d   : > { %v900_v37 = vmul.f32 %v2607_v52, %v899_v35 }
 0x61f   : > { %v901_v38 = vmul.f32 0.5, %v900_v37 }
 0x621   : > { %v902_v39 = vsub.f32 1.5, %v901_v38 }
 0x623   : > { %v903_v41 = vmul.f32 %v2607_v52, %v902_v39 }
 0x625   : > { %v907_v43 = vsel %vm906_vm12, %v2607_v52, %v903_v41 }
 0x626   : > { %v908_v44 = vmul.f32 %v907_v43, %v3024_v4 }
 0x628   : > { %v910_v45 = vmul.f32 %v2582_v42, %v908_v44 }
 0x62a   : > { %v911_v46 = vpack.c.bf16 %v910_v45, %v910_v45 }
 0x62c   : > { %2207 = vmatmul.msk.bf16.vlgmr.msra.gmra.mxu3 %vm474_vm0, %v911_v46  ;;  %2208 = vmatmul.msk.bf16.vlgmr.msrb.gmra.mxu0 %vm474_vm0, %v911_v46 }
 0x62d   : > { %2209 = vmatmul.msk.bf16.vlgmr.msrb.gmra.mxu1 %vm474_vm0, %v911_v46  ;;  %2210 = vmatmul.msk.bf16.vlgmr.msrb.gmra.mxu2 %vm474_vm0, %v911_v46 }
 0x6a9   : > { %v985_v2 = vpop.f32.mrf.mxu0 }
 0x6aa   : > { %v2212_v3 = vmul.f32 -1.442695, %v985_v2  ;;  %v998_v5 = vpop.f32.mrf.mxu1 }
 0x6ac   : > { %2608 = vpow2.f32 %v2212_v3  ;;  %v2284_v3 = vor.u32 %v2484_v1, %v2283_v63 }
 0x6ae   : > { %1270 = vmatpush.bf16.msra.mxu1 %v2284_v3 }
 0x6af   : > { %v972_v8 = vpop.f32.mrf.mxu3 }
 0x6b0   : > { %v2211_v9 = vmul.f32 -1.442695, %v972_v8  ;;  %v1011_v0 = vpop.f32.mrf.mxu2 }
 0x6b1   : > { %v987_v10 = vpop.f32.mrf.mxu0 }
 0x6b2   : > { %v2609_v11 = vpop.eup %2608  ;;  %2610 = vpow2.f32 %v2211_v9  ;;  %v1000_v12 = vpop.f32.mrf.mxu1 }
 0x6b3   : > { %v1022_v13 = vadd.f32 1.0, %v2609_v11 }
 0x6b5   : > { %2612 = vrcp.f32 %v1022_v13  ;;  %v1049_v21 = vand.u32 2147483648, %v1022_v13  ;;  %v1047_v23 = vand.u32 2147483647, %v1022_v13  ;;  %vm1043_vm14 = vweird.f32 %v1022_v13 }
 0x6b7   : > { %v974_v14 = vpop.f32.mrf.mxu3  ;;  %v1050_v28 = vor.u32 1.1754944e-38, %v1049_v21  ;;  %vm1048_vm1 = vcmp.eq.f32.partialorder %v1047_v23, 8.507059e+37 }
 0x6b8   : > { %v2611_v15 = vpop.eup %2610  ;;  %v1013_v16 = vpop.f32.mrf.mxu2 }
 0x6b9   : > { %v1021_v17 = vadd.f32 1.0, %v2611_v15  ;;  %v2583_v15 = vld [vmem:[%s3320_s3 + $0x1] ss:$0 sm:$0xff] }
 0x6bb   : > { %v2613_v18 = vpop.eup %2612  ;;  %2614 = vrcp.f32 %v1021_v17  ;;  %v1034_v32 = vand.u32 2147483648, %v1021_v17  ;;  %v1032_v52 = vand.u32 2147483647, %v1021_v17  ;;  %vm1028_vm6 = vweird.f32 %v1021_v17 }
 0x6bc   : > { %v1039_v19 = vmul.f32 %v2613_v18, %v1022_v13  ;;  %vm1044_vm13 = vweird.f32 %v2613_v18 }
 0x6bd   : > { %vm1045_vm15 = vmor %vm1043_vm14, %vm1044_vm13  ;;  %v1035_v38 = vor.u32 1.1754944e-38, %v1034_v32  ;;  %vm1033_vm9 = vcmp.eq.f32.partialorder %v1032_v52, 8.507059e+37 }
 0x6be   : > { %v1040_v20 = vsub.f32 1.0, %v1039_v19 }
 0x6c0   : > { %v1041_v22 = vmul.f32 %v2613_v18, %v1040_v20 }
 0x6c1   : > { %v2615_v24 = vpop.eup %2614 }
 0x6c2   : > { %v1042_v26 = vadd.f32 %v2613_v18, %v1041_v22  ;;  %v1024_v27 = vmul.f32 %v2615_v24, %v1021_v17  ;;  %vm1029_vm5 = vweird.f32 %v2615_v24 }
 0x6c3   : > { %vm1030_vm7 = vmor %vm1028_vm6, %vm1029_vm5 }
 0x6c4   : > { %v1046_v29 = vsel %vm1045_vm15, %v2613_v18, %v1042_v26  ;;  %v1025_v30 = vsub.f32 1.0, %v1024_v27 }
 0x6c5   : > { %v1051_v31 = vsel %vm1048_vm1, %v1050_v28, %v1046_v29 }
 0x6c6   : > { %v1054_v33 = vmul.f32 %v1051_v31, %v985_v2  ;;  %v1026_v34 = vmul.f32 %v2615_v24, %v1025_v30  ;;  %v2483_v2 = vld [vmem:[%s3321_s4 + $0x24] sm:$0xf] }
 0x6c8   : > { %v1027_v35 = vadd.f32 %v2615_v24, %v1026_v34  ;;  %v1056_v37 = vmul.f32 %v1054_v33, %v1011_v0 }
 0x6ca   : > { %v1031_v39 = vsel %vm1030_vm7, %v2615_v24, %v1027_v35  ;;  %v1058_v41 = vpack.c.bf16 %v1056_v37, %v1056_v37 }
 0x6cb   : > { %v1036_v42 = vsel %vm1033_vm9, %v1035_v38, %v1031_v39 }
 0x6cc   : > { %v1053_v43 = vmul.f32 %v1036_v42, %v972_v8  ;;  %1208 = vmatmul.bf16.vlgmr.msra.gmra.mxu0 %v1058_v41 }
 0x6ce   : > { %v1055_v44 = vmul.f32 %v1053_v43, %v998_v5  ;;  %v2285_v5 = vld [vmem:[%s3321_s4 + $0x28] sm:$0xf0] }
 0x6cf   : > { %v2288_v6 = vor.u32 %v2483_v2, %v2285_v5 }
 0x6d0   : > { %v1057_v45 = vpack.c.bf16 %v1055_v44, %v1055_v44 }
 0x6d2   : > { %1195 = vmatmul.bf16.vlgmr.msrb.gmra.mxu3 %v1057_v45 }
 0x749   : > { %v1209_v46 = vpop.f32.mrf.mxu0 }
 0x751   : > { %v1211_v47 = vpop.f32.mrf.mxu0 }
 0x755   : > { %v1196_v48 = vpop.f32.mrf.mxu3 }
 0x756   : > { %v1210_v49 = vadd.f32 %v1209_v46, %v1196_v48 }
 0x758   : > { %v3087_v51 = vadd.f32 %v1210_v49, %v3024_v4  ;;  %v2485_v4 = vld [vmem:[%s3321_s4 + $0x34] sm:$0xf] }
 0x759   : > { %v2296_v62 = vor.u32 %v2485_v4, %v2293_v61 }
 0x75a   : > { %v1215_v53 = vmul.f32 %v3087_v51, %v3087_v51 }
 0x75b   : > { %1282 = vmatpush.bf16.msra.mxu2 %v2296_v62 }
 0x75c   : > { %v1216_v55 = vsel %vm474_vm0, %v1215_v53, 0.0 }
 0x75d   : > { %v1198_v56 = vpop.f32.mrf.mxu3  ;;  %1217 = vadd.xlane.f32.xlu0 %v1216_v55 }
 0x75f   : > { %1283 = vmatpush.bf16.msra.mxu2 %v2288_v6 }
 0x7d0   : > { %v1218_v7 = vpop.xlane.xlu0 %1217 }
 0x7d1   : > { %v1219_v8 = vmul.f32 %v1218_v7, %v2927_v25 }
 0x7d3   : > { %v1220_v9 = vadd.f32 1e-06, %v1219_v8 }
 0x7d5   : > { %2616 = vrsqrt.f32 %v1220_v9  ;;  %vm1227_vm11 = vweird.f32 %v1220_v9 }
 0x7db   : > { %v2617_v0 = vpop.eup %2616 }
 0x7dc   : > { %v1222_v10 = vmul.f32 %v2617_v0, %v1220_v9  ;;  %vm1228_vm10 = vweird.f32 %v2617_v0 }
 0x7dd   : > { %vm1229_vm12 = vmor %vm1227_vm11, %vm1228_vm10 }
 0x7de   : > { %v1223_v11 = vmul.f32 %v2617_v0, %v1222_v10 }
 0x7e0   : > { %v1224_v12 = vmul.f32 0.5, %v1223_v11 }
 0x7e2   : > { %v1225_v13 = vsub.f32 1.5, %v1224_v12 }
 0x7e4   : > { %v1226_v14 = vmul.f32 %v2617_v0, %v1225_v13 }
 0x7e6   : > { %v1230_v16 = vsel %vm1229_vm12, %v2617_v0, %v1226_v14 }
 0x7e7   : > { %v1231_v17 = vmul.f32 %v1230_v16, %v3087_v51 }
 0x7e9   : > { %v1233_v18 = vmul.f32 %v2583_v15, %v1231_v17 }
 0x7eb   : > { %v1234_v19 = vpack.c.bf16 %v1233_v18, %v1233_v18 }
 0x7ed   : > { %2297 = vmatmul.msk.bf16.vlgmr.msra.gmra.mxu1 %vm474_vm0, %v1234_v19  ;;  %2298 = vmatmul.msk.bf16.vlgmr.msra.gmra.mxu2 %vm474_vm0, %v1234_v19 }
 0x86a   : > { %v1272_v20 = vpop.f32.mrf.mxu1 }
 0x86b   : > { %v1297_v21 = vmul.f32 %v1272_v20, %v2948_v50  ;;  %v1290_v24 = vmul.f32 %v1272_v20, %v2954_v54  ;;  %v1296_v27 = vmul.f32 %v1272_v20, %v2958_v58  ;;  %v1289_v50 = vmul.f32 %v1272_v20, %v2933_v36 }
 0x86d   : > { %1299 = vrot.lane.b32.xlu1 %v1297_v21, %s3358_s15 }
 0x870   : > { %v3125_v22 = vpop.f32.mrf.mxu2 }
 0x871   : > { %v1341_v53 = vpack.c.bf16 %v3125_v22, %v3125_v22 }
 0x872   : > { %v1274_v23 = vpop.f32.mrf.mxu1 }
 0x873   : > { %v1493_v57 = vsel %vm768_vm8, %v1341_v53, 0 }
 0x875   : > { %1292 = vrot.lane.b32.xlu1 %v1290_v24, %s3358_s15  ;;  %s2019_s15 = scalar_lea.sflag [#allocation4], %s418_s8 }
 0x878   : > { %v1287_v26 = vpop.f32.mrf.mxu2 }
 0x8df   : > { %v1300_v28 = vpop.permute.xlu1 %1299 }
 0x8e0   : > { %v1302_v29 = vadd.f32 %v1300_v28, %v1296_v27 }
 0x8e2   : > { %1321 = vrot.lane.b32.xlu0 %v1302_v29, %s3359_s16  ;;  %1318 = vrot.lane.b32.xlu2 %v1302_v29, %s3360_s14  ;;  %v1327_v34 = vpack.c.bf16 %v1302_v29, %v1302_v29 }
 0x8e3   : > { %1324 = vrot.lane.b32.xlu1 %v1302_v29, %s3361_s22 }
 0x8e4   : > { %v1346_v52 = vunpack.c.l.b16 %v1327_v34 }
 0x8e6   : > { %v1347_v35 = vpack.c.b16 %v1346_v52, %v1346_v52 }
 0x8e7   : > { %v1293_v30 = vpop.permute.xlu1 %1292 }
 0x8e8   : > { %v1295_v31 = vadd.f32 %v1293_v30, %v1289_v50 }
 0x8ea   : > { %1304 = vrot.lane.b32.xlu2 %v1295_v31, %s3360_s14  ;;  %v1313_v59 = vpack.c.bf16 %v1295_v31, %v1295_v31 }
 0x8f2   : > { %1310 = vrot.lane.b32.xlu2 %v1295_v31, %s3361_s22 }
 0x93c   : > { %v1319_v54 = vpop.permute.xlu2 %1318 }
 0x93d   : > { %v1328_v32 = vpack.c.bf16 %v1319_v54, %v1319_v54 }
 0x93f   : > { %v1370_v33 = vunpack.c.l.b16 %v1328_v32 }
 0x941   : > { %v1371_v58 = vpack.c.b16 %v1370_v33, %v1370_v33 }
 0x943   : > { %1372 = vrot.lane.b32.xlu1 %v1371_v58, %s3362_s25 }
 0x944   : > { %v1305_v47 = vpop.permute.xlu2 %1304 }
 0x945   : > { %v1314_v48 = vpack.c.bf16 %v1305_v47, %v1305_v47 }
 0x94b   : > { %1307 = vrot.lane.b32.xlu1 %v1295_v31, %s3359_s16 }
 0x94c   : > { %v1311_v1 = vpop.permute.xlu2 %1310 }
 0x94d   : > { %v1316_v2 = vpack.c.bf16 %v1311_v1, %v1311_v1 }
 0x953   : > { %1348 = vrot.lane.b32.xlu1 %v1347_v35, %s3362_s25 }
 0x954   : > { %v1322_v36 = vpop.permute.xlu0 %1321 }
 0x955   : > { %v1329_v37 = vpack.c.bf16 %v1322_v36, %v1322_v36  ;;  %v1325_v38 = vpop.permute.xlu1 %1324 }
 0x956   : > { %v1330_v42 = vpack.c.bf16 %v1325_v38, %v1325_v38 }
 0x957   : > { %v1394_v39 = vunpack.c.l.b16 %v1329_v37 }
 0x958   : > { %v1418_v43 = vunpack.c.l.b16 %v1330_v42 }
 0x959   : > { %v1395_v41 = vpack.c.b16 %v1394_v39, %v1394_v39 }
 0x95a   : > { %v1419_v44 = vpack.c.b16 %v1418_v43, %v1418_v43 }
 0x95b   : > { %1396 = vrot.lane.b32.xlu0 %v1395_v41, %s3362_s25 }
 0x963   : > { %1420 = vrot.lane.b32.xlu0 %v1419_v44, %s3362_s25  ;;  %s2696_s25 = scalar_lea.hbm %s3328_s11, 32 }
 0x9b5   : > { %v1373_v45 = vpop.permute.xlu1 %1372 }
 0x9b6   : > { %v1378_v46 = vsel %vm446_vm2, %v1373_v45, 0 }
 0x9b7   : > { %1387 = vmatpush.bf16.xpose.msrb.mxu2 %v1378_v46 }
 0x9bd   : > { %v1308_v49 = vpop.permute.xlu1 %1307 }
 0x9be   : > { %2300 = vmatmul.msk.bf16.vlgmr.msrb.gmra.mxu2 %vm446_vm2, %v1314_v48  ;;  %v1315_v61 = vpack.c.bf16 %v1308_v49, %v1308_v49 }
 0x9c5   : > { %v1349_v55 = vpop.permute.xlu1 %1348 }
 0x9c6   : > { %v1354_v56 = vsel %vm446_vm2, %v1349_v55, 0 }
 0x9c7   : > { %1363 = vmatpush.bf16.xpose.msrb.mxu1 %v1354_v56 }
 0x9cd   : > { %v1397_v4 = vpop.permute.xlu0 %1396 }
 0x9ce   : > { %v1402_v60 = vsel %vm446_vm2, %v1397_v4, 0  ;;  %2299 = vmatmul.msk.bf16.vlgmr.msrb.gmra.mxu1 %vm446_vm2, %v1313_v59 }
 0x9cf   : > { %1502 = vmatpush.bf16.msra.mxu1 %v1493_v57  ;;  %1411 = vmatpush.bf16.xpose.msra.mxu3 %v1402_v60 }
 0x9d5   : > { %v1421_v62 = vpop.permute.xlu0 %1420 }
 0x9d6   : > { %v1426_v63 = vsel %vm446_vm2, %v1421_v62, 0  ;;  %2301 = vmatmul.msk.bf16.vlgmr.msra.gmra.mxu3 %vm446_vm2, %v1315_v61 }
 0x9d7   : > { %1435 = vmatpush.bf16.xpose.msrb.mxu0 %v1426_v63 }
 0x9de   : > { %2302 = vmatmul.msk.bf16.vlgmr.msrb.gmra.mxu0 %vm446_vm2, %v1316_v2 }
 0xa41   : > { %v1389_v3 = vpop.f32.mrf.mxu2 }
 0xa42   : > { %v1390_v5 = vadd.f32 %v1389_v3, %v2983_v40 }
 0xa44   : > { %v1444_v6 = vsel %vm446_vm2, %v1390_v5, -inf }
 0xa45   : > { %1445 = vmax.xlane.f32.xlu0 %v1444_v6 }
 0xa49   : > { %v1391_v7 = vpop.f32.mrf.mxu2 }
 0xa4b   : > { %v1365_v8 = vpop.f32.mrf.mxu1 }
 0xa4c   : > { %v1366_v9 = vadd.f32 %v1365_v8, %v2983_v40 }
 0xa4e   : > { %v1441_v0 = vsel %vm446_vm2, %v1366_v9, -inf }
 0xa4f   : > { %1442 = vmax.xlane.f32.xlu0 %v1441_v0 }
 0xa53   : > { %v1367_v10 = vpop.f32.mrf.mxu1 }
 0xa54   : > { %v2488_v10 = vld [vmem:[%s3322_s5 + $0x18] sm:$0xff] }
 0xa55   : > { %1607 = vmatpush.bf16.msrb.mxu1 %v2488_v10  ;;  %v2507_v10 = vld [vmem:[#allocation2 + $0xd0] sm:$0xff] }
 0xa59   : > { %v1413_v11 = vpop.f32.mrf.mxu3 }
 0xa5a   : > { %v1414_v12 = vadd.f32 %v1413_v11, %v2983_v40  ;;  %v2487_v11 = vld [vmem:[%s3322_s5 + $0x10] sm:$0xff] }
 0xa5b   : > { %v1437_v13 = vpop.f32.mrf.mxu0  ;;  %1608 = vmatpush.bf16.msrb.mxu1 %v2487_v11 }
 0xa5c   : > { %v1438_v14 = vadd.f32 %v1437_v13, %v2983_v40  ;;  %v1447_v15 = vsel %vm446_vm2, %v1414_v12, -inf }
 0xa5d   : > { %1448 = vmax.xlane.f32.xlu2 %v1447_v15 }
 0xa5e   : > { %v1450_v16 = vsel %vm446_vm2, %v1438_v14, -inf }
 0xa5f   : > { %1451 = vmax.xlane.f32.xlu1 %v1450_v16 }
 0xa61   : > { %v1415_v17 = vpop.f32.mrf.mxu3 }
 0xa63   : > { %v1439_v18 = vpop.f32.mrf.mxu0  ;;  %1332 = vrot.lane.b32.xlu0 %v3125_v22, %s3360_s14 }
 0xab8   : > { %v1446_v19 = vpop.xlane.xlu0 %1445 }
 0xab9   : > { %v1454_v20 = vsub.f32 %v1390_v5, %v1446_v19 }
 0xabb   : > { %v1459_v21 = vmul.f32 1.442695, %v1454_v20 }
 0xabd   : > { %2618 = vpow2.f32 %v1459_v21 }
 0xac2   : > { %v1443_v23 = vpop.xlane.xlu0 %1442 }
 0xac3   : > { %v2619_v24 = vpop.eup %2618  ;;  %v1453_v26 = vsub.f32 %v1366_v9, %v1443_v23 }
 0xac4   : > { %v1468_v40 = vsel %vm446_vm2, %v2619_v24, 0.0 }
 0xac5   : > { %v1457_v27 = vmul.f32 1.442695, %v1453_v26  ;;  %1469 = vadd.xlane.f32.xlu2 %v1468_v40  ;;  %v2346_v26 = vld [vmem:[%s3324_s7 + $0x60] sm:$0xf]  ;;  %v2495_v40 = vld [vmem:[%s3324_s7 + $0x6c] sm:$0xf0] }
 0xac7   : > { %2620 = vpow2.f32 %v1457_v27  ;;  %v2347_v27 = vor.u32 %v2495_v40, %v2346_v26 }
 0xacd   : > { %v2621_v28 = vpop.eup %2620 }
 0xace   : > { %v1465_v29 = vsel %vm446_vm2, %v2621_v28, 0.0 }
 0xacf   : > { %1466 = vadd.xlane.f32.xlu0 %v1465_v29  ;;  %v2354_v29 = vld [vmem:[%s3324_s7 + $0x68] sm:$0xf] }
 0xad0   : > { %v1449_v50 = vpop.xlane.xlu2 %1448 }
 0xad1   : > { %v1455_v54 = vsub.f32 %v1414_v12, %v1449_v50  ;;  %v2496_v50 = vld [vmem:[%s3324_s7 + $0x74] sm:$0xf0] }
 0xad2   : > { %v1452_v30 = vpop.xlane.xlu1 %1451 }
 0xad3   : > { %v1456_v31 = vsub.f32 %v1438_v14, %v1452_v30  ;;  %v1461_v52 = vmul.f32 1.442695, %v1455_v54  ;;  %v2494_v54 = vld [vmem:[%s3324_s7 + $0x6c] sm:$0xf] }
 0xad5   : > { %v1463_v32 = vmul.f32 1.442695, %v1456_v31  ;;  %v1333_v33 = vpop.permute.xlu0 %1332  ;;  %v2355_v31 = vor.u32 %v2496_v50, %v2354_v29 }
 0xad6   : > { %v1342_v58 = vpack.c.bf16 %v1333_v33, %v1333_v33 }
 0xad7   : > { %2622 = vpow2.f32 %v1463_v32  ;;  %v2356_v32 = vld [vmem:[%s3324_s7 + $0x78] sm:$0xf0] }
 0xad8   : > { %v1512_v34 = vsel %vm768_vm8, %v1342_v58, 0  ;;  %2624 = vpow2.f32 %v1461_v52  ;;  %v2359_v33 = vor.u32 %v2494_v54, %v2356_v32  ;;  %v2330_v58 = vld [vmem:[%s3324_s7 + $0x40] sm:$0xf]  ;;  %v2489_v52 = vld [vmem:[%s3324_s7 + $0x44] sm:$0xf] }
 0xad9   : > { %1521 = vmatpush.bf16.msra.mxu2 %v1512_v34  ;;  %v2491_v34 = vld [vmem:[%s3324_s7 + $0x4c] sm:$0xf0] }
 0xadd   : > { %v2623_v35 = vpop.eup %2622  ;;  %1335 = vrot.lane.b32.xlu2 %v3125_v22, %s3359_s16  ;;  %1694 = vmatpush.bf16.msrb.mxu2 %v2347_v27 }
 0xade   : > { %v1474_v36 = vsel %vm446_vm2, %v2623_v35, 0.0  ;;  %v2625_v37 = vpop.eup %2624 }
 0xadf   : > { %1475 = vadd.xlane.f32.xlu1 %v1474_v36  ;;  %v1471_v38 = vsel %vm446_vm2, %v2625_v37, 0.0  ;;  %v2332_v36 = vld [vmem:[%s3324_s7 + $0x50] sm:$0xf0] }
 0xae7   : > { %1472 = vadd.xlane.f32.xlu1 %v1471_v38  ;;  %v2492_v38 = vld [vmem:[%s3324_s7 + $0x54] sm:$0xf0] }
 0xb00   : > { %1338 = vrot.lane.b32.xlu1 %v3125_v22, %s3361_s22 }
 0xb38   : > { %v1470_v39 = vpop.xlane.xlu2 %1469 }
 0xb39   : > { %2626 = vrcp.f32 %v1470_v39  ;;  %v2335_v39 = vor.u32 %v2489_v52, %v2332_v36 }
 0xb3f   : > { %v2627_v41 = vpop.eup %2626 }
 0xb40   : > { %v1482_v42 = vmul.f32 %v2627_v41, %v2619_v24  ;;  %v1336_v43 = vpop.permute.xlu2 %1335 }
 0xb41   : > { %v1343_v44 = vpack.c.bf16 %v1336_v43, %v1336_v43  ;;  %v2340_v43 = vld [vmem:[%s3324_s7 + $0x58] sm:$0xf0] }
 0xb42   : > { %v1486_v45 = vpack.c.bf16 %v1482_v42, %v1482_v42  ;;  %v1467_v46 = vpop.xlane.xlu0 %1466  ;;  %v2490_v42 = vld [vmem:[%s3324_s7 + $0x4c] sm:$0xf] }
 0xb43   : > { %v1531_v47 = vsel %vm768_vm8, %v1343_v44, 0  ;;  %2628 = vrcp.f32 %v1467_v46  ;;  %v2343_v44 = vor.u32 %v2490_v42, %v2340_v43 }
 0xb44   : > { %2304 = vmatmul.msk.bf16.vlgmr.msra.gmra.mxu2 %vm446_vm2, %v1486_v45  ;;  %1540 = vmatpush.bf16.msrb.mxu3 %v1531_v47 }
 0xb49   : > { %v2629_v48 = vpop.eup %2628 }
 0xb4a   : > { %v1481_v49 = vmul.f32 %v2629_v48, %v2621_v28  ;;  %v2348_v28 = vld [vmem:[%s3324_s7 + $0x70] sm:$0xf0] }
 0xb4c   : > { %v1485_v53 = vpack.c.bf16 %v1481_v49, %v1481_v49 }
 0xb4e   : > { %2303 = vmatmul.msk.bf16.vlgmr.msra.gmra.mxu1 %vm446_vm2, %v1485_v53 }
 0xb4f   : > { %1733 = vmatpush.bf16.msra.mxu1 %v2359_v33 }
 0xb52   : > { %v1476_v22 = vpop.xlane.xlu1 %1475 }
 0xb53   : > { %1734 = vmatpush.bf16.msra.mxu1 %v2343_v44 }
 0xb5a   : > { %v1473_v55 = vpop.xlane.xlu1 %1472 }
 0xb5b   : > { %2630 = vrcp.f32 %v1473_v55 }
 0xb5c   : > { %2632 = vrcp.f32 %v1476_v22 }
 0xb61   : > { %v2631_v56 = vpop.eup %2630 }
 0xb62   : > { %v1483_v57 = vmul.f32 %v2631_v56, %v2625_v37  ;;  %v2633_v4 = vpop.eup %2632  ;;  %v2338_v37 = vld [vmem:[%s3324_s7 + $0x48] sm:$0xf] }
 0xb63   : > { %v1484_v61 = vmul.f32 %v2633_v4, %v2623_v35  ;;  %v2331_v35 = vor.u32 %v2491_v34, %v2330_v58  ;;  %v2339_v41 = vor.u32 %v2492_v38, %v2338_v37 }
 0xb64   : > { %v1487_v59 = vpack.c.bf16 %v1483_v57, %v1483_v57  ;;  %v2584_v57 = vld [vmem:[%s3323_s6 + $0x1] ss:$0 sm:$0xff] }
 0xb65   : > { %v1488_v1 = vpack.c.bf16 %v1484_v61, %v1484_v61  ;;  %1695 = vmatpush.bf16.msrb.mxu2 %v2331_v35 }
 0xb66   : > { %2305 = vmatmul.msk.bf16.vlgmr.msrb.gmra.mxu3 %vm446_vm2, %v1487_v59 }
 0xb72   : > { %v1339_v60 = vpop.permute.xlu1 %1338 }
 0xb73   : > { %v1344_v62 = vpack.c.bf16 %v1339_v60, %v1339_v60 }
 0xb75   : > { %v1550_v63 = vsel %vm768_vm8, %v1344_v62, 0  ;;  %v2504_v62 = vld [vmem:[#allocation2 + $0xb8] sm:$0xff] }
 0xb76   : > { %1559 = vmatpush.bf16.msra.mxu0 %v1550_v63  ;;  %v2512_v63 = vld [vmem:[#allocation2 + $0xf8] sm:$0xff]  ;;  %1913 = vmatpush.bf16.msra.mxu2 %v2504_v62 }
 0xb79   : > { %2306 = vmatmul.msk.bf16.vlgmr.msra.gmra.mxu0 %vm446_vm2, %v1488_v1  ;;  %v2503_v1 = vld [vmem:[#allocation2 + $0xb0] sm:$0xff] }
 0xb7a   : > { %1720 = vmatpush.bf16.msrb.mxu0 %v2355_v31  ;;  %1914 = vmatpush.bf16.msra.mxu2 %v2503_v1  ;;  %v2440_v1 = vld [vmem:[%s3327_s10 + $0x10] sm:$0xf] }
 0xb7e   : > { %1721 = vmatpush.bf16.msrb.mxu0 %v2339_v41 }
 0xbc7   : > { %v1523_v2 = vpop.f32.mrf.mxu2 }
 0xbc8   : > { %1566 = vrot.lane.b32.xlu2 %v1523_v2, %s3356_s13  ;;  %v2511_v2 = vld [vmem:[#allocation2 + $0xf0] sm:$0xff]  ;;  %s2030_s13 = scalar_lea.hbm %s3328_s11, %s2517_s24 }
 0xbc9   : > { %s2034_s2 = sshll.u32 %s2030_s13, 4  ;;  %s2035_s2 = int_to_ptr.hbm [resolvable:$true] %s2034_s2 }
 0xbca   : > { %s2690_s16 = sshra.s32 %s2035_s2, 4  ;;  %s2691_s16 = int_to_ptr.hbm [resolvable:$true] %s2690_s16 }
 0xbcb   : > { %v1504_v3 = vpop.f32.mrf.mxu1  ;;  %s2692_s14 = scalar_lea.hbm %s2691_s16, 16  ;;  %p2697_p3 = scmp.lt.s32.totalorder %s2691_s16, %s3328_s11 }
 0xbcc   : > { %p2693_p0 = scmp.ne.s32.totalorder %s2691_s16, %s2692_s14  ;;  %p2698_p4 = scmp.lt.s32.totalorder %s2696_s25, %s2692_s14 }
 0xbce   : > { %p2694_p1 = pnand %p2693_p0, %p2856_p5  ;;  %p2699_p7 = por %p2698_p4, %p2697_p3 }
 0xbcf   : > { %v1525_v5 = vpop.f32.mrf.mxu2 }
 0xbd0   : > { %v2510_v5 = vld [vmem:[#allocation2 + $0xe8] sm:$0xff]  ;;  %p2695_p2 = pneg %p2694_p1 }
 0xbd2   : > { %p2700_p8 = pnand %p2699_p7, %p2695_p2 }
 0xbd3   : > { %v1506_v6 = vpop.f32.mrf.mxu1 }
 0xbd4   : > { %v2501_v6 = vld [vmem:[#allocation2 + $0xa0] sm:$0xff] }
 0xbe9   : > { %v1542_v7 = vpop.f32.mrf.mxu3 }
 0xbea   : > { %1570 = vrot.lane.b32.xlu2 %v1542_v7, %s3355_s30  ;;  %v2509_v7 = vld [vmem:[#allocation2 + $0xe0] sm:$0xff] }
 0xbf1   : > { %v1544_v8 = vpop.f32.mrf.mxu3 }
 0xbf2   : > { %v2500_v8 = vld [vmem:[#allocation2 + $0x98] sm:$0xff] }
 0xbf6   : > { %v1561_v9 = vpop.f32.mrf.mxu0 }
 0xbf7   : > { %1574 = vrot.lane.b32.xlu1 %v1561_v9, %s3357_s12  ;;  %v2508_v9 = vld [vmem:[#allocation2 + $0xd8] sm:$0xff]  ;;  %s420_s12 = scalar_lea.vmem [#allocation5], %s2136_s29 }
 0xbf8   : > { %s2032_s1 = sshll.u32 %s420_s12, 4  ;;  %s2033_s1 = int_to_ptr.vmem [resolvable:$true] %s2032_s1 }
 0xbfe   : > { %v1563_v0 = vpop.f32.mrf.mxu0 }
 0xbff   : > { %v2499_v0 = vld [vmem:[#allocation2 + $0x90] sm:$0xff] }
 0xc22   : > { %v1567_v12 = vpop.permute.xlu2 %1566 }
 0xc23   : > { %v1577_v14 = vsel %vm446_vm2, %v1504_v3, %v1567_v12  ;;  %v2502_v3 = vld [vmem:[#allocation2 + $0xa8] sm:$0xff] }
 0xc24   : > { %1915 = vmatpush.bf16.msra.mxu2 %v2502_v3  ;;  %v2515_v3 = vld [vmem:[%s3327_s10 + $0x14] sm:$0xf] }
 0xc28   : > { %1916 = vmatpush.bf16.msra.mxu2 %v2501_v6 }
 0xc2c   : > { %1917 = vmatpush.bf16.msra.mxu2 %v2500_v8  ;;  %v2514_v8 = vld [vmem:[%s3327_s10 + $0x4] sm:$0xf0] }
 0xc30   : > { %1918 = vmatpush.bf16.msra.mxu2 %v2499_v0 }
 0xc44   : > { %v1571_v13 = vpop.permute.xlu2 %1570 }
 0xc45   : > { %v1578_v15 = vsel %vm448_vm3, %v1577_v14, %v1571_v13  ;;  %v2498_v13 = vld [vmem:[#allocation2 + $0x88] sm:$0xff] }
 0xc46   : > { %v2506_v14 = vld [vmem:[#allocation2 + $0xc8] sm:$0xff]  ;;  %1919 = vmatpush.bf16.msra.mxu2 %v2498_v13 }
 0xc69   : > { %v1575_v16 = vpop.permute.xlu1 %1574 }
 0xc6a   : > { %v1579_v17 = vsel %vm450_vm4, %v1578_v15, %v1575_v16  ;;  %v2497_v15 = vld [vmem:[#allocation2 + $0x80] sm:$0xff] }
 0xc6b   : > { %v1580_v18 = vpack.c.bf16 %v1579_v17, %v1579_v17  ;;  %v2505_v16 = vld [vmem:[#allocation2 + $0xc0] sm:$0xff]  ;;  %1920 = vmatpush.bf16.msra.mxu2 %v2497_v15 }
 0xc6d   : > { %2319 = vmatmul.msk.bf16.vlgmr.msrb.gmra.mxu1 %vm474_vm0, %v1580_v18 }
 0xcea   : > { %v1610_v19 = vpop.f32.mrf.mxu1 }
 0xceb   : > { %v3191_v20 = vadd.f32 %v1610_v19, %v3087_v51  ;;  %v2493_v51 = vld [vmem:[%s3324_s7 + $0x64] sm:$0xf] }
 0xcec   : > { %v2351_v30 = vor.u32 %v2493_v51, %v2348_v28 }
 0xced   : > { %v1616_v21 = vmul.f32 %v3191_v20, %v3191_v20 }
 0xcee   : > { %1707 = vmatpush.bf16.msra.mxu3 %v2351_v30 }
 0xcef   : > { %v1617_v23 = vsel %vm474_vm0, %v1616_v21, 0.0 }
 0xcf0   : > { %1618 = vadd.xlane.f32.xlu2 %v1617_v23 }
 0xcf2   : > { %v1612_v24 = vpop.f32.mrf.mxu1  ;;  %1708 = vmatpush.bf16.msra.mxu3 %v2335_v39 }
 0xcf6   : > { %1926 = vmatpush.bf16.msrb.mxu3 %v2512_v63 }
 0xcfa   : > { %1927 = vmatpush.bf16.msrb.mxu3 %v2511_v2  ;;  %v2516_v2 = vld [vmem:[%s3327_s10 + $0x14] sm:$0xf0] }
 0xcfe   : > { %1928 = vmatpush.bf16.msrb.mxu3 %v2510_v5  ;;  %v2441_v5 = vor.u32 %v2516_v2, %v2440_v1 }
 0xd00   : > { %1996 = vmatpush.bf16.msra.mxu0 %v2441_v5 }
 0xd02   : > { %1929 = vmatpush.bf16.msrb.mxu3 %v2509_v7  ;;  %v2432_v7 = vld [vmem:[%s3327_s10] sm:$0xf] }
 0xd03   : > { %v2433_v0 = vor.u32 %v2514_v8, %v2432_v7 }
 0xd05   : > { %1997 = vmatpush.bf16.msra.mxu0 %v2433_v0 }
 0xd06   : > { %1930 = vmatpush.bf16.msrb.mxu3 %v2508_v9  ;;  %v2513_v9 = vld [vmem:[%s3327_s10 + $0x4] sm:$0xf] }
 0xd0a   : > { %1931 = vmatpush.bf16.msrb.mxu3 %v2507_v10  ;;  %v2434_v10 = vld [vmem:[%s3327_s10 + $0x8] sm:$0xf0] }
 0xd0e   : > { %1932 = vmatpush.bf16.msrb.mxu3 %v2506_v14 }
 0xd12   : > { %1933 = vmatpush.bf16.msrb.mxu3 %v2505_v16 }
 0xd63   : > { %v1619_v45 = vpop.xlane.xlu2 %1618 }
 0xd64   : > { %v1620_v46 = vmul.f32 %v1619_v45, %v2927_v25 }
 0xd66   : > { %v1621_v47 = vadd.f32 1e-06, %v1620_v46 }
 0xd68   : > { %2634 = vrsqrt.f32 %v1621_v47  ;;  %vm1628_vm3 = vweird.f32 %v1621_v47 }
 0xd6e   : > { %v2635_v48 = vpop.eup %2634 }
 0xd6f   : > { %v1623_v49 = vmul.f32 %v2635_v48, %v1621_v47  ;;  %vm1629_vm2 = vweird.f32 %v2635_v48 }
 0xd70   : > { %vm1630_vm4 = vmor %vm1628_vm3, %vm1629_vm2 }
 0xd71   : > { %v1624_v53 = vmul.f32 %v2635_v48, %v1623_v49 }
 0xd73   : > { %v1625_v22 = vmul.f32 0.5, %v1624_v53 }
 0xd75   : > { %v1626_v55 = vsub.f32 1.5, %v1625_v22 }
 0xd77   : > { %v1627_v56 = vmul.f32 %v2635_v48, %v1626_v55 }
 0xd79   : > { %v1631_v59 = vsel %vm1630_vm4, %v2635_v48, %v1627_v56 }
 0xd7a   : > { %v1632_v4 = vmul.f32 %v1631_v59, %v3191_v20 }
 0xd7c   : > { %v1634_v60 = vmul.f32 %v2584_v57, %v1632_v4 }
 0xd7e   : > { %v1635_v61 = vpack.c.bf16 %v1634_v60, %v1634_v60 }
 0xd80   : > { %2360 = vmatmul.msk.bf16.vlgmr.msrb.gmra.mxu2 %vm474_vm0, %v1635_v61  ;;  %2361 = vmatmul.msk.bf16.vlgmr.msra.gmra.mxu3 %vm474_vm0, %v1635_v61 }
 0xd81   : > { %2362 = vmatmul.msk.bf16.vlgmr.msrb.gmra.mxu0 %vm474_vm0, %v1635_v61  ;;  %2363 = vmatmul.msk.bf16.vlgmr.msra.gmra.mxu1 %vm474_vm0, %v1635_v61 }
 0xdfe   : > { %v1723_v11 = vpop.f32.mrf.mxu0  ;;  %v1736_v12 = vpop.f32.mrf.mxu1 }
 0xe03   : > { %v1697_v17 = vpop.f32.mrf.mxu2  ;;  %v1710_v18 = vpop.f32.mrf.mxu3 }
 0xe04   : > { %v2364_v19 = vmul.f32 -1.442695, %v1697_v17  ;;  %v2365_v21 = vmul.f32 -1.442695, %v1710_v18 }
 0xe06   : > { %2636 = vpow2.f32 %v2364_v19  ;;  %v1725_v23 = vpop.f32.mrf.mxu0  ;;  %v1738_v24 = vpop.f32.mrf.mxu1 }
 0xe07   : > { %2638 = vpow2.f32 %v2365_v21  ;;  %v2585_v23 = vld [vmem:[%s3326_s9] ss:$0 sm:$0xff] }
 0xe0b   : > { %v1699_v26 = vpop.f32.mrf.mxu2  ;;  %v1712_v40 = vpop.f32.mrf.mxu3 }
 0xe0c   : > { %v2637_v51 = vpop.eup %2636 }
 0xe0d   : > { %v2639_v27 = vpop.eup %2638  ;;  %v1746_v28 = vadd.f32 1.0, %v2637_v51 }
 0xe0e   : > { %v1747_v29 = vadd.f32 1.0, %v2639_v27 }
 0xe0f   : > { %2640 = vrcp.f32 %v1746_v28  ;;  %v1759_v33 = vand.u32 2147483648, %v1746_v28  ;;  %v1757_v52 = vand.u32 2147483647, %v1746_v28  ;;  %vm1753_vm14 = vweird.f32 %v1746_v28 }
 0xe10   : > { %2642 = vrcp.f32 %v1747_v29  ;;  %v1774_v35 = vand.u32 2147483648, %v1747_v29  ;;  %v1772_v37 = vand.u32 2147483647, %v1747_v29  ;;  %vm1768_vm1 = vweird.f32 %v1747_v29 }
 0xe11   : > { %v1760_v39 = vor.u32 1.1754944e-38, %v1759_v33  ;;  %vm1758_vm5 = vcmp.eq.f32.partialorder %v1757_v52, 8.507059e+37 }
 0xe12   : > { %v1775_v43 = vor.u32 1.1754944e-38, %v1774_v35  ;;  %vm1773_vm7 = vcmp.eq.f32.partialorder %v1772_v37, 8.507059e+37 }
 0xe15   : > { %v2641_v50 = vpop.eup %2640 }
 0xe16   : > { %v2643_v30 = vpop.eup %2642  ;;  %v1749_v31 = vmul.f32 %v2641_v50, %v1746_v28  ;;  %vm1754_vm8 = vweird.f32 %v2641_v50 }
 0xe17   : > { %v1764_v54 = vmul.f32 %v2643_v30, %v1747_v29  ;;  %vm1769_vm13 = vweird.f32 %v2643_v30  ;;  %vm1755_vm15 = vmor %vm1753_vm14, %vm1754_vm8 }
 0xe18   : > { %v1750_v32 = vsub.f32 1.0, %v1749_v31  ;;  %vm1770_vm6 = vmor %vm1768_vm1, %vm1769_vm13 }
 0xe19   : > { %v1765_v58 = vsub.f32 1.0, %v1764_v54 }
 0xe1a   : > { %v1751_v34 = vmul.f32 %v2641_v50, %v1750_v32 }
 0xe1b   : > { %v1766_v36 = vmul.f32 %v2643_v30, %v1765_v58 }
 0xe1c   : > { %v1752_v38 = vadd.f32 %v2641_v50, %v1751_v34 }
 0xe1d   : > { %v1767_v41 = vadd.f32 %v2643_v30, %v1766_v36 }
 0xe1e   : > { %v1756_v42 = vsel %vm1755_vm15, %v2641_v50, %v1752_v38 }
 0xe1f   : > { %v1761_v44 = vsel %vm1758_vm5, %v1760_v39, %v1756_v42  ;;  %v1771_v45 = vsel %vm1770_vm6, %v2643_v30, %v1767_v41 }
 0xe20   : > { %v1778_v46 = vmul.f32 %v1761_v44, %v1697_v17  ;;  %v1776_v47 = vsel %vm1773_vm7, %v1775_v43, %v1771_v45 }
 0xe21   : > { %v1779_v48 = vmul.f32 %v1776_v47, %v1710_v18 }
 0xe22   : > { %v1780_v49 = vmul.f32 %v1778_v46, %v1723_v11  ;;  %v2437_v11 = vor.u32 %v2513_v9, %v2434_v10 }
 0xe23   : > { %v1781_v53 = vmul.f32 %v1779_v48, %v1736_v12 }
 0xe24   : > { %v1782_v22 = vpack.c.bf16 %v1780_v49, %v1780_v49 }
 0xe25   : > { %v1783_v55 = vpack.c.bf16 %v1781_v53, %v1781_v53 }
 0xe26   : > { %1921 = vmatmul.bf16.vlgmr.msra.gmra.mxu2 %v1782_v22 }
 0xe27   : > { %1934 = vmatmul.bf16.vlgmr.msrb.gmra.mxu3 %v1783_v55 }
 0xea9   : > { %v1922_v56 = vpop.f32.mrf.mxu2 }
 0xeaa   : > { %v1935_v57 = vpop.f32.mrf.mxu3 }
 0xeab   : > { %v1936_v59 = vadd.f32 %v1935_v57, %v1922_v56 }
 0xead   : > { %v1939_v4 = vadd.f32 %v1936_v59, %v3191_v20  ;;  %v2442_v20 = vld [vmem:[%s3327_s10 + $0x18] sm:$0xf0] }
 0xeae   : > { %v2445_v6 = vor.u32 %v2515_v3, %v2442_v20 }
 0xeaf   : > { %v1941_v60 = vmul.f32 %v1939_v4, %v1939_v4 }
 0xeb0   : > { %2009 = vmatpush.bf16.msrb.mxu1 %v2445_v6 }
 0xeb1   : > { %v1924_v61 = vpop.f32.mrf.mxu2  ;;  %v1942_v62 = vsel %vm474_vm0, %v1941_v60, 0.0 }
 0xeb2   : > { %v1937_v63 = vpop.f32.mrf.mxu3  ;;  %1943 = vadd.xlane.f32.xlu1 %v1942_v62 }
 0xeb4   : > { %2010 = vmatpush.bf16.msrb.mxu1 %v2437_v11 }
 0xf25   : > { %v1944_v12 = vpop.xlane.xlu1 %1943 }
 0xf26   : > { %v1945_v13 = vmul.f32 %v1944_v12, %v2927_v25 }
 0xf28   : > { %v1946_v14 = vadd.f32 1e-06, %v1945_v13 }
 0xf2a   : > { %2644 = vrsqrt.f32 %v1946_v14  ;;  %vm1953_vm10 = vweird.f32 %v1946_v14 }
 0xf30   : > { %v2645_v15 = vpop.eup %2644 }
 0xf31   : > { %v1948_v16 = vmul.f32 %v2645_v15, %v1946_v14  ;;  %vm1954_vm9 = vweird.f32 %v2645_v15 }
 0xf32   : > { %vm1955_vm11 = vmor %vm1953_vm10, %vm1954_vm9 }
 0xf33   : > { %v1949_v17 = vmul.f32 %v2645_v15, %v1948_v16 }
 0xf35   : > { %v1950_v18 = vmul.f32 0.5, %v1949_v17 }
 0xf37   : > { %v1951_v19 = vsub.f32 1.5, %v1950_v18 }
 0xf39   : > { %v1952_v21 = vmul.f32 %v2645_v15, %v1951_v19 }
 0xf3b   : > { %v1956_v24 = vsel %vm1955_vm11, %v2645_v15, %v1952_v21 }
 0xf3c   : > { %v1957_v26 = vmul.f32 %v1956_v24, %v1939_v4 }
 0xf3e   : > { %v1961_v25 = vmul.f32 %v2585_v23, %v1957_v26 }
 0xf40   : > { %v1962_v40 = vpack.c.bf16 %v1961_v25, %v1961_v25 }
 0xf42   : > { %2446 = vmatmul.msk.bf16.vlgmr.msra.gmra.mxu0 %vm474_vm0, %v1962_v40  ;;  %2447 = vmatmul.msk.bf16.vlgmr.msrb.gmra.mxu1 %vm474_vm0, %v1962_v40 }
 0xfbf   : > { %v1999_v51 = vpop.f32.mrf.mxu0  ;;  %v2012_v27 = vpop.f32.mrf.mxu1 }
 0xfc0   : > { %2016 = vst [vmem:[%s420_s12] sm:$0xff] %v1999_v51 }
 0xfc1   : > { %2017 = vst [vmem:[%s420_s12 + $0x8] sm:$0xff] %v2012_v27 }
 0xfc2   : > { %2703 = shalt.err (!%p2700_p8)
}
 0xfc3   : > { %2522 = dma.vmem_to_hbm [thread:$0]  (%p2856_p5), %s2033_s1, 256, %s2035_s2, %s2019_s15  }
 0xfc7   : > { %v2001_v28 = vpop.f32.mrf.mxu0  ;;  %v2014_v29 = vpop.f32.mrf.mxu1 }
 0xfc8 PF: > { %p2534_p9 = scmp.ge.s32.totalorder %s2742_s20, 2  ;;  %s2046_s8 = sand.u32 1, %s2730_s17  }
 0xfc9   : > { %s2047_s0 = scalar_lea.sflag [#allocation4], %s2046_s8 }
 0xfca   : > { %p2529_p10 = pnand %p2534_p9, %p2860_p6 }
 0xfcc   : > { %p2530_p11 = pneg %p2529_p10 }
 0xfce   : > { %2725 = dma.done.wait (%p2530_p11), %s2047_s0, 256  }
 0xfcf   : > { %2727 = vsyncadd (%p2530_p11), %s2047_s0, 4294967040  ;;  %p22_p5 = scmp.ge.s32.totalorder %s2843_s23, 4   ;;  %s3363_s17 = smov %s2734_s18 }
 0xfd0   : > { %s3364_s18 = smov %s2738_s19  ;;  %s3365_s19 = smov %s2854_s26 }
 0xfd1   : > { %s3366_s20 = smov %s2843_s23  ;;  %24 = sbr.rel (!%p22_p5) target bundleno = 9 (0x9), region = 114 }
 0xfd6   :  { %2053 = vsyncpa [#allocation3], 1 }
 0xfd7   :  { %2055 = vsyncpa [#allocation3 + $0x1], 1 }
 0xfd8   :  { %2056 = vsyncpa [#allocation4], 1 }
 0xfd9   :  { %2058 = vsyncpa [#allocation4 + $0x1], 1 }

</bundles_post_ra>
